<compile_context>
chip_gen: v7x
topology: tpu7x:2x2x1
jax: 0.10.0
libtpu: 0.0.40
codegen_flags: <defaults>
</compile_context>

<pallas_src>
import numpy as np
import jax
import jax.numpy as jnp
from jax.experimental import pallas as pl
from jax.experimental.pallas import tpu as pltpu


_PAD = 16  # scratch guard rows on each side of the conv1 output; >=1 is
           # needed for the +/-1-element dx overrun, 16 keeps the o1 store
           # offset aligned for bf16 sublane packing.


# ----------------------------------------------------------------------------
# Kernel: one (batch, row-block) grid step of the fused bottleneck.
# ----------------------------------------------------------------------------
def _bottleneck_kernel(x_ref, w1_ref, w2_ref, w3_ref, b1_ref, b2_ref, b3_ref,
                       o_ref, o1pad_ref):
    # x_ref:     (H+2, W, Cin)   bf16, input zero-padded by 1 row top/bottom
    # w1_ref:    (Cin, C1)       bf16, BN1 scale folded in
    # w2_ref:    (9*C1, C1)      bf16, BN2 scale folded in, rows ordered [tap, ci]
    # w3_ref:    (C1, Cout)      bf16, BN3 scale folded in
    # b*_ref:    (1, C)          f32 BN shifts
    # o_ref:     (Hblk, W, Cout) f32
    # o1pad_ref: (_PAD + (Hblk+2)*W + _PAD, C1) bf16 scratch (conv1 output)
    W, Cin = x_ref.shape[1], x_ref.shape[2]
    Hblk, Cout = o_ref.shape[0], o_ref.shape[2]
    C1 = w1_ref.shape[1]
    Lh = (Hblk + 2) * W          # block rows incl. 1-row halo, flattened
    Lo = Hblk * W                # output rows, flattened
    i = pl.program_id(1)
    nblk = pl.num_programs(1)

    # Rows [i*Hblk, i*Hblk + Hblk + 2) of the H-padded input (block + halo).
    row0 = pl.multiple_of(i * Hblk, Hblk)
    xh = x_ref[pl.ds(row0, Hblk + 2), :, :]              # (Hblk+2, W, Cin) bf16
    xf = xh.reshape(Lh, Cin)                             # W % 8 == 0 -> layout-preserving

    # ---- conv1 (1x1) + BN1 + ReLU, written once to the bf16 scratch ----
    o1 = jnp.dot(xf, w1_ref[...], preferred_element_type=jnp.float32)
    o1 = jnp.maximum(o1 + b1_ref[...], 0.0)
    o1pad_ref[pl.ds(_PAD, Lh), :] = o1.astype(jnp.bfloat16)

    # Halo rows outside the image must be zero so conv2's implicit zero
    # padding along H is honoured (a padded input row would give relu(b1)).
    # Only the first / last row block has such a row.
    @pl.when(i == 0)
    def _():
        o1pad_ref[pl.ds(_PAD, W), :] = jnp.zeros((W, C1), jnp.bfloat16)

    @pl.when(i == nblk - 1)
    def _():
        o1pad_ref[pl.ds(_PAD + (Hblk + 1) * W, W), :] = jnp.zeros(
            (W, C1), jnp.bfloat16)

    # ---- conv2 (3x3, stride 1, pad 1) + BN2 + ReLU ----
    # im2col along K: out[r] = concat_t o1pad[start_t + r] @ w2   (K = 9*C1).
    # Column masks (hoisted out of the tap loop) zero taps that crossed a row
    # edge; the +/-1-element scratch overruns land only on masked positions.
    cols = jax.lax.broadcasted_iota(jnp.int32, (Lo, 1), 0) % W
    mask_l = cols >= 1            # valid positions for dx = -1
    mask_r = cols <= W - 2        # valid positions for dx = +1

    taps = []
    for t in range(9):                                   # static unroll
        dy, dx = t // 3 - 1, t % 3 - 1
        start = _PAD + W + dy * W + dx                   # static offset
        tap = o1pad_ref[pl.ds(start, Lo), :]             # (Lo, C1) bf16
        if dx == -1:
            tap = jnp.where(mask_l, tap, 0.0)
        elif dx == 1:
            tap = jnp.where(mask_r, tap, 0.0)
        taps.append(tap)
    im2col = jnp.concatenate(taps, axis=-1)              # (Lo, 9*C1) bf16
    o2 = jnp.dot(im2col, w2_ref[...], preferred_element_type=jnp.float32)
    o2 = jnp.maximum(o2 + b2_ref[...], 0.0)

    # ---- conv3 (1x1) + BN3 + identity residual + ReLU ----
    o3 = jnp.dot(o2.astype(jnp.bfloat16), w3_ref[...],
                 preferred_element_type=jnp.float32)
    res = xh[1:Hblk + 1, :, :].reshape(Lo, Cin).astype(jnp.float32)
    out = jnp.maximum(o3 + b3_ref[...] + res, 0.0)
    o_ref[...] = out.reshape(Hblk, W, Cout).astype(o_ref.dtype)


# ----------------------------------------------------------------------------
# Wrapper
# ----------------------------------------------------------------------------
def bottleneck_forward(x_nchw, p, block_h=None):
    """x_nchw: (N, Cin, H, W) float32.  p: folded params (see fold_params).
    Returns (N, Cout, H, W) float32."""
    N, Cin, H, W = x_nchw.shape
    C1 = p["w1"].shape[1]
    Cout = p["w3"].shape[1]
    assert Cout == Cin, "identity residual requires inplanes == planes*expansion"
    assert W % 8 == 0, "W must be a multiple of 8 for a layout-preserving flatten"
    if block_h is None:
        # Aim for >= ~512 flattened rows per block (long MXU LHS streams,
        # amortizes the 2-row halo recompute and per-step overhead).
        target = max(1, 512 // W)
        block_h = 1
        for bh in range(1, H + 1):
            if H % bh == 0 and bh <= target:
                block_h = bh
        if block_h * W < 256:
            block_h = H
    assert H % block_h == 0
    nblk = H // block_h

    # NHWC, bf16 (the conv path runs in bf16 anyway; halves HBM input bytes),
    # zero-padded by 1 row top/bottom for the 3x3 halo.
    x = jnp.transpose(x_nchw, (0, 2, 3, 1)).astype(jnp.bfloat16)
    x = jnp.pad(x, ((0, 0), (1, 1), (0, 0), (0, 0)))

    flops = 2 * N * H * W * (Cin * C1 + 9 * C1 * C1 + C1 * Cout)
    bytes_accessed = (2 * x.size + 4 * N * H * W * Cout
                      + 2 * (p["w1"].size + p["w2"].size + p["w3"].size)
                      + 4 * (p["b1"].size + p["b2"].size + p["b3"].size))

    # VMEM working-set estimate -> explicit scoped-VMEM limit (with headroom),
    # capped so it stays safe on v7x's 64 MiB.
    vmem_need = (2 * (H + 2) * W * Cin * 2              # x block (bf16), 2 bufs
                 + 2 * block_h * W * Cout * 4           # out block (f32), 2 bufs
                 + 2 * 2 * (Cin * C1 + 9 * C1 * C1 + C1 * Cout)  # weights bf16
                 + 2 * 4 * (2 * C1 + Cout)              # biases f32
                 + (2 * _PAD + (block_h + 2) * W) * C1 * 2)      # o1 scratch
    vmem_limit = int(min(max(2 * vmem_need, 16 * 1024 * 1024), 64 * 1024 * 1024))

    out = pl.pallas_call(
        _bottleneck_kernel,
        out_shape=jax.ShapeDtypeStruct((N, H, W, Cout), jnp.float32),
        grid_spec=pltpu.PrefetchScalarGridSpec(
            num_scalar_prefetch=0,
            grid=(N, nblk),
            in_specs=[
                # Whole padded image of batch n (bf16); constant over i ->
                # DMA'd once per batch element and revisited across row blocks.
                pl.BlockSpec((None, H + 2, W, Cin), lambda n, i: (n, 0, 0, 0)),
                pl.BlockSpec((Cin, C1), lambda n, i: (0, 0)),        # w1
                pl.BlockSpec((9 * C1, C1), lambda n, i: (0, 0)),     # w2 (im2col K)
                pl.BlockSpec((C1, Cout), lambda n, i: (0, 0)),       # w3
                pl.BlockSpec((1, C1), lambda n, i: (0, 0)),          # bn1 shift
                pl.BlockSpec((1, C1), lambda n, i: (0, 0)),          # bn2 shift
                pl.BlockSpec((1, Cout), lambda n, i: (0, 0)),        # bn3 shift
            ],
            out_specs=pl.BlockSpec((None, block_h, W, Cout),
                                   lambda n, i: (n, i, 0, 0)),
            scratch_shapes=[
                pltpu.VMEM((2 * _PAD + (block_h + 2) * W, C1), jnp.bfloat16),
            ],
        ),
        compiler_params=pltpu.CompilerParams(
            dimension_semantics=("parallel", "parallel"),
            vmem_limit_bytes=vmem_limit),
        cost_estimate=pl.CostEstimate(flops=int(flops), transcendentals=0,
                                      bytes_accessed=int(bytes_accessed)),
    )(x, p["w1"], p["w2"], p["w3"], p["b1"], p["b2"], p["b3"])

    return jnp.transpose(out, (0, 3, 1, 2))              # back to NCHW


# ----------------------------------------------------------------------------
# Deterministic synthetic parameters (shapes follow nn.Conv2d / nn.BatchNorm2d)
# ----------------------------------------------------------------------------
def init_params(key, inplanes, planes, expansion=4, eps=1e-5):
    C1, Cout = planes, planes * expansion
    ks = jax.random.split(key, 6)

    # PyTorch conv weights are (out, in, kh, kw); store transposed for NHWC matmul.
    w1_t = jax.random.normal(ks[0], (C1, inplanes), jnp.float32) / np.sqrt(inplanes)
    w2_t = jax.random.normal(ks[1], (C1, C1, 3, 3), jnp.float32) / np.sqrt(9 * C1)
    w3_t = jax.random.normal(ks[2], (Cout, C1), jnp.float32) / np.sqrt(C1)

    w1 = w1_t.T                                   # (Cin, C1)
    w2_hwio = jnp.transpose(w2_t, (2, 3, 1, 0))   # (3, 3, ci, co)
    w3 = w3_t.T                                   # (C1, Cout)

    def bn(k, C):
        kg, kb, km, kv = jax.random.split(k, 4)
        gamma = 1.0 + 0.1 * jax.random.normal(kg, (C,), jnp.float32)
        beta = 0.1 * jax.random.normal(kb, (C,), jnp.float32)
        mean = 0.1 * jax.random.normal(km, (C,), jnp.float32)
        var = 1.0 + 0.1 * jax.random.uniform(kv, (C,), jnp.float32)
        scale = gamma / jnp.sqrt(var + eps)       # eval-mode BN -> scale/shift
        shift = beta - mean * scale
        return scale.reshape(1, C), shift.reshape(1, C)

    s1, b1 = bn(ks[3], C1)
    s2, b2 = bn(ks[4], C1)
    s3, b3 = bn(ks[5], Cout)
    return dict(w1=w1, w2_hwio=w2_hwio, w3=w3,
                s1=s1, b1=b1, s2=s2, b2=b2, s3=s3, b3=b3)


def fold_params(p, compute_dtype=jnp.bfloat16):
    """Fold the BN scales into the conv weights (host side), reshape w2 to the
    im2col K layout (rows ordered [tap, ci]) and cast weights to the MXU
    compute dtype; biases stay f32."""
    C1 = p["w1"].shape[1]
    w2_tap = p["w2_hwio"].reshape(9, C1, C1)      # tap-major (ky, kx), (ci, co)
    w2_k = (w2_tap * p["s2"][None]).reshape(9 * C1, C1)
    return dict(
        w1=(p["w1"] * p["s1"]).astype(compute_dtype),
        w2=w2_k.astype(compute_dtype),
        w3=(p["w3"] * p["s3"]).astype(compute_dtype),
        b1=p["b1"], b2=p["b2"], b3=p["b3"])


# Pure-JAX f32 reference (NHWC) of the PyTorch Bottleneck forward.
def reference_forward(x_nhwc, p):
    hi = jax.lax.Precision.HIGHEST
    o1 = jnp.einsum("nhwc,cd->nhwd", x_nhwc, p["w1"], precision=hi)
    o1 = jnp.maximum(o1 * p["s1"][0] + p["b1"][0], 0.0)
    o2 = jax.lax.conv_general_dilated(
        o1, p["w2_hwio"], (1, 1), ((1, 1), (1, 1)),
        dimension_numbers=("NHWC", "HWIO", "NHWC"), precision=hi)
    o2 = jnp.maximum(o2 * p["s2"][0] + p["b2"][0], 0.0)
    o3 = jnp.einsum("nhwd,de->nhwe", o2, p["w3"], precision=hi)
    o3 = o3 * p["s3"][0] + p["b3"][0]
    return jnp.maximum(o3 + x_nhwc, 0.0)


if __name__ == "__main__":
    key = jax.random.PRNGKey(0)
    kx, kp = jax.random.split(key)

    # inplanes == planes * expansion so the identity residual is valid;
    # Cout = 128 keeps the output store lane-dense.  block_h=8 -> two row
    # blocks per image, so the halo / boundary-zeroing path is exercised.
    N, inplanes, planes, H, W = 2, 128, 32, 16, 16
    x = jax.random.normal(kx, (N, inplanes, H, W), jnp.float32)  # NCHW input
    params = init_params(kp, inplanes, planes)
    kparams = fold_params(params)

    out = bottleneck_forward(x, kparams, block_h=8)
    out = jax.block_until_ready(out)

    ref = reference_forward(jnp.transpose(x, (0, 2, 3, 1)), params)
    ref = jnp.transpose(ref, (0, 3, 1, 2))

    assert out.shape == (N, planes * 4, H, W)
    # bf16 input / weights / conv path vs. a fully f32 reference.
    np.testing.assert_allclose(np.asarray(out), np.asarray(ref),
                               rtol=5e-2, atol=7e-2)
    print("KERNEL_OK")
</pallas_src>

<mosaic_0001>
module attributes {stable_mosaic.version = 11 : i64} {
  func.func @_bottleneck_kernel(%arg0: i32, %arg1: i32, %arg2: memref<1x18x16x128xbf16, #tpu.memory_space<vmem>>, %arg3: memref<128x32xbf16, #tpu.memory_space<vmem>>, %arg4: memref<288x32xbf16, #tpu.memory_space<vmem>>, %arg5: memref<32x128xbf16, #tpu.memory_space<vmem>>, %arg6: memref<1x32xf32, #tpu.memory_space<vmem>>, %arg7: memref<1x32xf32, #tpu.memory_space<vmem>>, %arg8: memref<1x128xf32, #tpu.memory_space<vmem>>, %arg9: memref<1x8x16x128xf32, #tpu.memory_space<vmem>>, %arg10: memref<192x32xbf16, #tpu.memory_space<vmem>>) attributes {dimension_semantics = [#tpu.dimension_semantics<parallel>, #tpu.dimension_semantics<parallel>], iteration_bounds = array<i64: 2, 2>, scalar_prefetch = 0 : i64, scratch_operands = 1 : i64, tpu.core_type = #tpu.core_type<tc>, window_params = [{transform_indices = @transform_0, window_bounds = array<i64: 1, 18, 16, 128>}, {pipeline_mode = #tpu.pipeline_mode<synchronous>, transform_indices = @transform_1, window_bounds = array<i64: 128, 32>}, {pipeline_mode = #tpu.pipeline_mode<synchronous>, transform_indices = @transform_2, window_bounds = array<i64: 288, 32>}, {pipeline_mode = #tpu.pipeline_mode<synchronous>, transform_indices = @transform_3, window_bounds = array<i64: 32, 128>}, {pipeline_mode = #tpu.pipeline_mode<synchronous>, transform_indices = @transform_4, window_bounds = array<i64: 1, 32>}, {pipeline_mode = #tpu.pipeline_mode<synchronous>, transform_indices = @transform_5, window_bounds = array<i64: 1, 32>}, {pipeline_mode = #tpu.pipeline_mode<synchronous>, transform_indices = @transform_6, window_bounds = array<i64: 1, 128>}, {transform_indices = @transform_7, window_bounds = array<i64: 1, 8, 16, 128>}]} {
    %c8_i32 = arith.constant 8 : i32
    %0 = arith.muli %arg1, %c8_i32 : i32
    %1 = tpu.assume_multiple %0, 8 : i32
    %c0 = arith.constant 0 : index
    %2 = arith.index_cast %1 : i32 to index
    %c0_0 = arith.constant 0 : index
    %c0_1 = arith.constant 0 : index
    %3 = vector.load %arg2[%c0, %2, %c0_0, %c0_1] : memref<1x18x16x128xbf16, #tpu.memory_space<vmem>>, vector<1x10x16x128xbf16>
    %4 = vector.shape_cast %3 : vector<1x10x16x128xbf16> to vector<10x16x128xbf16>
    %5 = vector.shape_cast %4 : vector<10x16x128xbf16> to vector<160x128xbf16>
    %c0_2 = arith.constant 0 : index
    %c0_3 = arith.constant 0 : index
    %6 = vector.load %arg3[%c0_2, %c0_3] : memref<128x32xbf16, #tpu.memory_space<vmem>>, vector<128x32xbf16>
    %cst = arith.constant dense<0.000000e+00> : vector<160x32xf32>
    %7 = tpu.matmul %5, %6, %cst {dimension_numbers = #tpu.dot_dimension_numbers<[1], [0], [0], [1], [0, 0, 1, 1], [], []>} : vector<160x128xbf16>, vector<128x32xbf16>, vector<160x32xf32> -> vector<160x32xf32>
    %c0_4 = arith.constant 0 : index
    %c0_5 = arith.constant 0 : index
    %8 = vector.load %arg6[%c0_4, %c0_5] : memref<1x32xf32, #tpu.memory_space<vmem>>, vector<1x32xf32>
    %9 = vector.broadcast %8 : vector<1x32xf32> to vector<160x32xf32>
    %10 = arith.addf %7, %9 : vector<160x32xf32>
    %cst_6 = arith.constant 0.000000e+00 : f32
    %11 = vector.broadcast %cst_6 : f32 to vector<160x32xf32>
    %12 = arith.maximumf %10, %11 : vector<160x32xf32>
    %13 = arith.truncf %12 : vector<160x32xf32> to vector<160x32xbf16>
    %c16 = arith.constant 16 : index
    %c0_7 = arith.constant 0 : index
    %14 = vector.load %arg10[%c16, %c0_7] : memref<192x32xbf16, #tpu.memory_space<vmem>>, vector<160x32xbf16>
    tpu.vector_store %arg10[%c16, %c0_7], %13 {strides = array<i32>} : memref<192x32xbf16, #tpu.memory_space<vmem>>, vector<160x32xbf16>,
    %c0_i32 = arith.constant 0 : i32
    %15 = arith.cmpi eq, %arg1, %c0_i32 : i32
    %16 = arith.extui %15 : i1 to i32
    %c0_i32_8 = arith.constant 0 : i32
    %17 = arith.cmpi ne, %16, %c0_i32_8 : i32
    scf.if %17 {
      %cst_48 = arith.constant 0.000000e+00 : bf16
      %105 = vector.broadcast %cst_48 : bf16 to vector<16x32xbf16>
      %c16_49 = arith.constant 16 : index
      %c0_50 = arith.constant 0 : index
      %106 = vector.load %arg10[%c16_49, %c0_50] : memref<192x32xbf16, #tpu.memory_space<vmem>>, vector<16x32xbf16>
      tpu.vector_store %arg10[%c16_49, %c0_50], %105 {strides = array<i32>} : memref<192x32xbf16, #tpu.memory_space<vmem>>, vector<16x32xbf16>,
    } else {
    }
    %c1_i32 = arith.constant 1 : i32
    %18 = arith.cmpi eq, %arg1, %c1_i32 : i32
    %19 = arith.extui %18 : i1 to i32
    %c0_i32_9 = arith.constant 0 : i32
    %20 = arith.cmpi ne, %19, %c0_i32_9 : i32
    scf.if %20 {
      %cst_48 = arith.constant 0.000000e+00 : bf16
      %105 = vector.broadcast %cst_48 : bf16 to vector<16x32xbf16>
      %c160 = arith.constant 160 : index
      %c0_49 = arith.constant 0 : index
      %106 = vector.load %arg10[%c160, %c0_49] : memref<192x32xbf16, #tpu.memory_space<vmem>>, vector<16x32xbf16>
      tpu.vector_store %arg10[%c160, %c0_49], %105 {strides = array<i32>} : memref<192x32xbf16, #tpu.memory_space<vmem>>, vector<16x32xbf16>,
    } else {
    }
    %21 = tpu.iota {dimensions = array<i32: 0>} : vector<128x1xi32>
    %c16_i32 = arith.constant 16 : i32
    %c0_i32_10 = arith.constant 0 : i32
    %22 = arith.cmpi eq, %c16_i32, %c0_i32_10 : i32
    %c1_i32_11 = arith.constant 1 : i32
    %23 = arith.select %22, %c1_i32_11, %c16_i32 : i32
    %24 = vector.broadcast %23 : i32 to vector<128x1xi32>
    %25 = arith.remsi %21, %24 : vector<128x1xi32>
    %c0_i32_12 = arith.constant 0 : i32
    %26 = vector.broadcast %c0_i32_12 : i32 to vector<128x1xi32>
    %27 = arith.cmpi ne, %25, %26 : vector<128x1xi32>
    %c0_i32_13 = arith.constant 0 : i32
    %28 = vector.broadcast %c0_i32_13 : i32 to vector<128x1xi32>
    %29 = arith.cmpi slt, %25, %28 : vector<128x1xi32>
    %c0_i32_14 = arith.constant 0 : i32
    %30 = arith.cmpi slt, %23, %c0_i32_14 : i32
    %31 = vector.broadcast %30 : i1 to vector<128x1xi1>
    %32 = vector.broadcast %31 : vector<128x1xi1> to vector<128x1xi1>
    %33 = arith.xori %29, %32 : vector<128x1xi1>
    %34 = arith.andi %33, %27 : vector<128x1xi1>
    %35 = vector.broadcast %23 : i32 to vector<128x1xi32>
    %36 = arith.addi %25, %35 : vector<128x1xi32>
    %37 = arith.select %34, %36, %25 : vector<128x1xi1>, vector<128x1xi32>
    %c1_i32_15 = arith.constant 1 : i32
    %38 = vector.broadcast %c1_i32_15 : i32 to vector<128x1xi32>
    %39 = arith.cmpi sge, %37, %38 : vector<128x1xi32>
    %c14_i32 = arith.constant 14 : i32
    %40 = vector.broadcast %c14_i32 : i32 to vector<128x1xi32>
    %41 = arith.cmpi sle, %37, %40 : vector<128x1xi32>
    %c15 = arith.constant 15 : index
    %c0_16 = arith.constant 0 : index
    %42 = vector.load %arg10[%c15, %c0_16] : memref<192x32xbf16, #tpu.memory_space<vmem>>, vector<128x32xbf16>
    %cst_17 = arith.constant 0.000000e+00 : f32
    %43 = arith.truncf %cst_17 : f32 to bf16
    %44 = vector.shape_cast %39 : vector<128x1xi1> to vector<128x1xi1>
    %45 = vector.broadcast %44 : vector<128x1xi1> to vector<128x32xi1>
    %46 = vector.broadcast %43 : bf16 to vector<128x32xbf16>
    %47 = arith.select %45, %42, %46 : vector<128x32xi1>, vector<128x32xbf16>
    %c16_18 = arith.constant 16 : index
    %c0_19 = arith.constant 0 : index
    %48 = vector.load %arg10[%c16_18, %c0_19] : memref<192x32xbf16, #tpu.memory_space<vmem>>, vector<128x32xbf16>
    %c17 = arith.constant 17 : index
    %c0_20 = arith.constant 0 : index
    %49 = vector.load %arg10[%c17, %c0_20] : memref<192x32xbf16, #tpu.memory_space<vmem>>, vector<128x32xbf16>
    %cst_21 = arith.constant 0.000000e+00 : f32
    %50 = arith.truncf %cst_21 : f32 to bf16
    %51 = vector.shape_cast %41 : vector<128x1xi1> to vector<128x1xi1>
    %52 = vector.broadcast %51 : vector<128x1xi1> to vector<128x32xi1>
    %53 = vector.broadcast %50 : bf16 to vector<128x32xbf16>
    %54 = arith.select %52, %49, %53 : vector<128x32xi1>, vector<128x32xbf16>
    %c31 = arith.constant 31 : index
    %c0_22 = arith.constant 0 : index
    %55 = vector.load %arg10[%c31, %c0_22] : memref<192x32xbf16, #tpu.memory_space<vmem>>, vector<128x32xbf16>
    %cst_23 = arith.constant 0.000000e+00 : f32
    %56 = arith.truncf %cst_23 : f32 to bf16
    %57 = vector.shape_cast %39 : vector<128x1xi1> to vector<128x1xi1>
    %58 = vector.broadcast %57 : vector<128x1xi1> to vector<128x32xi1>
    %59 = vector.broadcast %56 : bf16 to vector<128x32xbf16>
    %60 = arith.select %58, %55, %59 : vector<128x32xi1>, vector<128x32xbf16>
    %c32 = arith.constant 32 : index
    %c0_24 = arith.constant 0 : index
    %61 = vector.load %arg10[%c32, %c0_24] : memref<192x32xbf16, #tpu.memory_space<vmem>>, vector<128x32xbf16>
    %c33 = arith.constant 33 : index
    %c0_25 = arith.constant 0 : index
    %62 = vector.load %arg10[%c33, %c0_25] : memref<192x32xbf16, #tpu.memory_space<vmem>>, vector<128x32xbf16>
    %cst_26 = arith.constant 0.000000e+00 : f32
    %63 = arith.truncf %cst_26 : f32 to bf16
    %64 = vector.shape_cast %41 : vector<128x1xi1> to vector<128x1xi1>
    %65 = vector.broadcast %64 : vector<128x1xi1> to vector<128x32xi1>
    %66 = vector.broadcast %63 : bf16 to vector<128x32xbf16>
    %67 = arith.select %65, %62, %66 : vector<128x32xi1>, vector<128x32xbf16>
    %c47 = arith.constant 47 : index
    %c0_27 = arith.constant 0 : index
    %68 = vector.load %arg10[%c47, %c0_27] : memref<192x32xbf16, #tpu.memory_space<vmem>>, vector<128x32xbf16>
    %cst_28 = arith.constant 0.000000e+00 : f32
    %69 = arith.truncf %cst_28 : f32 to bf16
    %70 = vector.shape_cast %39 : vector<128x1xi1> to vector<128x1xi1>
    %71 = vector.broadcast %70 : vector<128x1xi1> to vector<128x32xi1>
    %72 = vector.broadcast %69 : bf16 to vector<128x32xbf16>
    %73 = arith.select %71, %68, %72 : vector<128x32xi1>, vector<128x32xbf16>
    %c48 = arith.constant 48 : index
    %c0_29 = arith.constant 0 : index
    %74 = vector.load %arg10[%c48, %c0_29] : memref<192x32xbf16, #tpu.memory_space<vmem>>, vector<128x32xbf16>
    %c49 = arith.constant 49 : index
    %c0_30 = arith.constant 0 : index
    %75 = vector.load %arg10[%c49, %c0_30] : memref<192x32xbf16, #tpu.memory_space<vmem>>, vector<128x32xbf16>
    %cst_31 = arith.constant 0.000000e+00 : f32
    %76 = arith.truncf %cst_31 : f32 to bf16
    %77 = vector.shape_cast %41 : vector<128x1xi1> to vector<128x1xi1>
    %78 = vector.broadcast %77 : vector<128x1xi1> to vector<128x32xi1>
    %79 = vector.broadcast %76 : bf16 to vector<128x32xbf16>
    %80 = arith.select %78, %75, %79 : vector<128x32xi1>, vector<128x32xbf16>
    %81 = tpu.concatenate %47, %48, %54, %60, %61, %67, %73, %74, %80 in 1 : vector<128x32xbf16>, vector<128x32xbf16>, vector<128x32xbf16>, vector<128x32xbf16>, vector<128x32xbf16>, vector<128x32xbf16>, vector<128x32xbf16>, vector<128x32xbf16>, vector<128x32xbf16> -> vector<128x288xbf16>
    %c0_32 = arith.constant 0 : index
    %c0_33 = arith.constant 0 : index
    %82 = vector.load %arg4[%c0_32, %c0_33] : memref<288x32xbf16, #tpu.memory_space<vmem>>, vector<288x32xbf16>
    %cst_34 = arith.constant dense<0.000000e+00> : vector<128x32xf32>
    %83 = tpu.matmul %81, %82, %cst_34 {dimension_numbers = #tpu.dot_dimension_numbers<[1], [0], [0], [1], [0, 0, 1, 1], [], []>} : vector<128x288xbf16>, vector<288x32xbf16>, vector<128x32xf32> -> vector<128x32xf32>
    %c0_35 = arith.constant 0 : index
    %c0_36 = arith.constant 0 : index
    %84 = vector.load %arg7[%c0_35, %c0_36] : memref<1x32xf32, #tpu.memory_space<vmem>>, vector<1x32xf32>
    %85 = vector.broadcast %84 : vector<1x32xf32> to vector<128x32xf32>
    %86 = arith.addf %83, %85 : vector<128x32xf32>
    %cst_37 = arith.constant 0.000000e+00 : f32
    %87 = vector.broadcast %cst_37 : f32 to vector<128x32xf32>
    %88 = arith.maximumf %86, %87 : vector<128x32xf32>
    %89 = arith.truncf %88 : vector<128x32xf32> to vector<128x32xbf16>
    %c0_38 = arith.constant 0 : index
    %c0_39 = arith.constant 0 : index
    %90 = vector.load %arg5[%c0_38, %c0_39] : memref<32x128xbf16, #tpu.memory_space<vmem>>, vector<32x128xbf16>
    %cst_40 = arith.constant dense<0.000000e+00> : vector<128x128xf32>
    %91 = tpu.matmul %89, %90, %cst_40 {dimension_numbers = #tpu.dot_dimension_numbers<[1], [0], [0], [1], [0, 0, 1, 1], [], []>} : vector<128x32xbf16>, vector<32x128xbf16>, vector<128x128xf32> -> vector<128x128xf32>
    %92 = vector.extract_strided_slice %4 {offsets = [1, 0, 0], sizes = [8, 16, 128], strides = [1, 1, 1]} : vector<10x16x128xbf16> to vector<8x16x128xbf16>
    %93 = vector.shape_cast %92 : vector<8x16x128xbf16> to vector<128x128xbf16>
    %94 = arith.extf %93 : vector<128x128xbf16> to vector<128x128xf32>
    %c0_41 = arith.constant 0 : index
    %c0_42 = arith.constant 0 : index
    %95 = vector.load %arg8[%c0_41, %c0_42] : memref<1x128xf32, #tpu.memory_space<vmem>>, vector<1x128xf32>
    %96 = vector.broadcast %95 : vector<1x128xf32> to vector<128x128xf32>
    %97 = arith.addf %91, %96 : vector<128x128xf32>
    %98 = arith.addf %97, %94 : vector<128x128xf32>
    %cst_43 = arith.constant 0.000000e+00 : f32
    %99 = vector.broadcast %cst_43 : f32 to vector<128x128xf32>
    %100 = arith.maximumf %98, %99 : vector<128x128xf32>
    %101 = vector.shape_cast %100 : vector<128x128xf32> to vector<8x16x128xf32>
    %c0_44 = arith.constant 0 : index
    %c0_45 = arith.constant 0 : index
    %c0_46 = arith.constant 0 : index
    %c0_47 = arith.constant 0 : index
    %102 = vector.load %arg9[%c0_44, %c0_45, %c0_46, %c0_47] : memref<1x8x16x128xf32, #tpu.memory_space<vmem>>, vector<1x8x16x128xf32>
    %103 = vector.shape_cast %102 : vector<1x8x16x128xf32> to vector<8x16x128xf32>
    %104 = vector.shape_cast %101 : vector<8x16x128xf32> to vector<1x8x16x128xf32>
    tpu.vector_store %arg9[%c0_44, %c0_45, %c0_46, %c0_47], %104 {strides = array<i32>} : memref<1x8x16x128xf32, #tpu.memory_space<vmem>>, vector<1x8x16x128xf32>,
    return
  }
  func.func @transform_0(%arg0: i32, %arg1: i32) -> (i32, i32, i32, i32) {
    %c0_i32 = arith.constant 0 : i32
    %c0_i32_0 = arith.constant 0 : i32
    %c0_i32_1 = arith.constant 0 : i32
    %c0_i32_2 = arith.constant 0 : i32
    return %arg0, %c0_i32, %c0_i32_0, %c0_i32_1 : i32, i32, i32, i32
  }
  func.func @transform_1(%arg0: i32, %arg1: i32) -> (i32, i32) {
    %c0_i32 = arith.constant 0 : i32
    %c0_i32_0 = arith.constant 0 : i32
    %c0_i32_1 = arith.constant 0 : i32
    return %c0_i32, %c0_i32_0 : i32, i32
  }
  func.func @transform_2(%arg0: i32, %arg1: i32) -> (i32, i32) {
    %c0_i32 = arith.constant 0 : i32
    %c0_i32_0 = arith.constant 0 : i32
    %c0_i32_1 = arith.constant 0 : i32
    return %c0_i32, %c0_i32_0 : i32, i32
  }
  func.func @transform_3(%arg0: i32, %arg1: i32) -> (i32, i32) {
    %c0_i32 = arith.constant 0 : i32
    %c0_i32_0 = arith.constant 0 : i32
    %c0_i32_1 = arith.constant 0 : i32
    return %c0_i32, %c0_i32_0 : i32, i32
  }
  func.func @transform_4(%arg0: i32, %arg1: i32) -> (i32, i32) {
    %c0_i32 = arith.constant 0 : i32
    %c0_i32_0 = arith.constant 0 : i32
    %c0_i32_1 = arith.constant 0 : i32
    return %c0_i32, %c0_i32_0 : i32, i32
  }
  func.func @transform_5(%arg0: i32, %arg1: i32) -> (i32, i32) {
    %c0_i32 = arith.constant 0 : i32
    %c0_i32_0 = arith.constant 0 : i32
    %c0_i32_1 = arith.constant 0 : i32
    return %c0_i32, %c0_i32_0 : i32, i32
  }
  func.func @transform_6(%arg0: i32, %arg1: i32) -> (i32, i32) {
    %c0_i32 = arith.constant 0 : i32
    %c0_i32_0 = arith.constant 0 : i32
    %c0_i32_1 = arith.constant 0 : i32
    return %c0_i32, %c0_i32_0 : i32, i32
  }
  func.func @transform_7(%arg0: i32, %arg1: i32) -> (i32, i32, i32, i32) {
    %c0_i32 = arith.constant 0 : i32
    %c0_i32_0 = arith.constant 0 : i32
    %c0_i32_1 = arith.constant 0 : i32
    return %arg0, %arg1, %c0_i32, %c0_i32_0 : i32, i32, i32, i32
  }
}

</mosaic_0001>

<bundles_post_ra>
// kernel: tpu_custom_call.1
= control target key start
LH: loop header
LB: loop body
LE: loop exit
PB: predicated region body
PF: predicated region fallthrough
CT: control target
= control target key end

     0   :  { %12 = vsyncpa [#allocation4], 0  ;;  %s4500_s0 = inlined_call_operand.hbm [shape: bf16[2,18,16,128], index: 0, kind: input, shape index: {}]   ;;  %s4501_s1 = inlined_call_operand.vmem [shape: bf16[128,32], index: 1, kind: input, shape index: {}]   ;;  %s4502_s2 = inlined_call_operand.vmem [shape: bf16[288,32], index: 2, kind: input, shape index: {}]   ;;  %s4503_s3 = inlined_call_operand.vmem [shape: bf16[32,128], index: 3, kind: input, shape index: {}]   ;;  %s4504_s4 = inlined_call_operand.vmem [shape: f32[1,32], index: 4, kind: input, shape index: {}]   ;;  %s4505_s5 = inlined_call_operand.vmem [shape: f32[1,32], index: 5, kind: input, shape index: {}]   ;;  %s4506_s6 = inlined_call_operand.vmem [shape: f32[1,128], index: 6, kind: input, shape index: {}]   ;;  %s4507_s7 = inlined_call_operand.hbm [shape: f32[2,16,16,128], index: 7, kind: output, shape index: {}]  }
   0x1   :  { %14 = vsyncpa [#allocation4 + $0x1], 0 }
   0x2   :  { %15 = vsyncpa [#allocation5], 0 }
   0x3   :  { %17 = vsyncpa [#allocation5 + $0x1], 0  ;;  %s3251_s24 = smov 0   ;;  %s3253_s25 = smov 0  }
   0x4   :  { %s3255_s26 = smov 0   ;;  %s3257_s27 = smov 0  }
   0x5   :  { %s3259_s28 = smov 0   ;;  %s3261_s29 = smov 0  }
   0x6   :  { %s3263_s30 = smov 0   ;;  %s3265_s8 = smov 0  }
   0x7   :  { %s3267_s9 = smov 0   ;;  %s3269_s10 = smov 0  }
   0x8   :  { %s3271_s11 = smov 0  }
   0x9 LB: > { %4518 = sst [smem:[#allocation9_spill]] %s3176_s29  ;;  %s2588_s12 = sadd.s32 4294967295, %s3196_s11   ;;  %s3196_s11 = sphi %s3271_s11, %s23_s11   ;;  %s3192_s10 = sphi %s3269_s10, %s4563_s10   ;;  %s3188_s9 = sphi %s3267_s9, %s4562_s9   ;;  %s3184_s8 = sphi %s3265_s8, %s4561_s8   ;;  %s3180_s30 = sphi %s3263_s30, %s4560_s30   ;;  %s3176_s29 = sphi %s3261_s29, %s4559_s29   ;;  %s3172_s28 = sphi %s3259_s28, %s4568_s28   ;;  %s3168_s27 = sphi %s3257_s27, %s4567_s27   ;;  %s3164_s26 = sphi %s3255_s26, %s4566_s26   ;;  %s3160_s25 = sphi %s3253_s25, %s4565_s25   ;;  %s3156_s24 = sphi %s3251_s24, %s4564_s24  }
   0xa   : > { %4519 = sst [smem:[#allocation10_spill]] %s3188_s9  ;;  %s2589_s13 = sadd.s32 4294967294, %s3196_s11  }
   0xb   : > { %4520 = sst [smem:[#allocation11_spill]] %s3192_s10  ;;  %s32_s14 = sadd.s32 1, %s3188_s9 }
   0xc   : > { %s35_s15 = sadd.s32 1, %s3192_s10  ;;  %p33_p0 = scmp.ge.s32.totalorder %s32_s14, 2 }
   0xd   : > { %s42_s16 = sadd.s32 1, %s3176_s29  ;;  %p49_p1 = scmp.ne.s32.totalorder %s3176_s29, %s3172_s28 }
   0xe   : > { %p50_p2 = scmp.eq.s32.totalorder %s3196_s11, 0  ;;  %s4570_s14 = smov (%p33_p0, %s32_s14), 0 }
   0xf   : > { %4521 = sst [smem:[#allocation12_spill]] %s4570_s14  ;;  %s4572_s15 = smov (!%p33_p0, %s35_s15), %s3192_s10 }
  0x10   : > { %p3315_p3 = por %p50_p2, %p49_p1  ;;  %p55_p4 = scmp.ne.s32.totalorder %s3172_s28, %s3168_s27 }
  0x11   : > { %p37_p5 = scmp.ge.s32.totalorder %s4572_s15, 2  ;;  %p56_p6 = scmp.eq.s32.totalorder %s2588_s12, 0 }
  0x12   : > { %s192_s18 = ssub.s32 %s3188_s9, %s4570_s14  ;;  %s196_s19 = sadd.s32 1, %s3164_s26 }
  0x13   : > { %s4574_s15 = smov (%p37_p5, %s4572_s15), 0  ;;  %p3325_p7 = por %p56_p6, %p55_p4 }
  0x14   : > { %4523 = sst [smem:[#allocation13_spill]] %s4574_s15  ;;  %p206_p8 = scmp.ne.s32.totalorder %s3164_s26, %s3160_s25 }
  0x15   : > { %s39_s21 = ssub.s32 %s3192_s10, %s4574_s15  ;;  %p207_p9 = scmp.eq.s32.totalorder %s2588_s12, 3 }
  0x16   : > { %p40_p10 = scmp.eq.s32.totalorder %s39_s21, 0  ;;  %s193_s22 = sor.u32 %s192_s18, %s39_s21 }
  0x17   : > { %p194_p11 = scmp.eq.s32.totalorder %s193_s22, 0  ;;  %p3333_p12 = por %p207_p9, %p206_p8 }
  0x18   : > { %s3338_s27 = scalar_select %p40_p10, %s3176_s29, %s42_s16  }
  0x19   : > { %s4525_s23 = scalar_select %p3333_p12, 1, 0 }
  0x1a   : > { %4526 = sst [smem:[#allocation14_spill]] %s3338_s27  ;;  %p212_p13 = scmp.ne.s32.totalorder %s3160_s25, %s3156_s24 }
  0x1b   : > { %s3341_s14 = scalar_select %p194_p11, %s3164_s26, %s196_s19  }
  0x1c   : > { %p213_p0 = scmp.eq.s32.totalorder %s2589_s13, 3  ;;  %p2892_p1 = scmp.lt.s32.totalorder %s3196_s11, 4 }
  0x1d   : > { %s251_s12 = sand.u32 1, %s3176_s29   ;;  %s2878_s18 = smul.u32 2304, %s3192_s10 }
  0x1e   : > { %p3346_p2 = por %p213_p0, %p212_p13  ;;  %s2877_s15 = smul.u32 144, %s251_s12 }
  0x1f   : > { %p3354_p4 = pnand %p2892_p1, %p3315_p3  ;;  %s3361_s19 = scalar_lea.hbm %s4500_s0, %s2878_s18 }
  0x20   : > { %s4527_s9 = scalar_select %p3346_p2, 1, 0 }
  0x21   : > { %s255_s13 = scalar_lea.vmem [#allocation3], %s2877_s15  ;;  %s3366_s17 = scalar_lea.sflag [#allocation4], %s251_s12 }
  0x22   : > { %s262_s27 = sshll.u32 %s255_s13, 4  ;;  %s3044_s10 = scalar_lea.hbm %s3361_s19, 2304  ;;  %s3363_s27 = int_to_ptr.vmem [resolvable:$true] %s262_s27 }
  0x23   : > { %p3045_p3 = scmp.ne.s32.totalorder %s3361_s19, %s3044_s10  ;;  %p3046_p6 = pneg %p3354_p4 }
  0x24   : > { %s3049_s16 = scalar_lea.hbm %s4500_s0, 4608  ;;  %p3050_p10 = scmp.lt.u32.totalorder %s3361_s19, %s4500_s0 }
  0x25   : > { %p3047_p8 = pnand %p3046_p6, %p3045_p3  ;;  %p3051_p11 = scmp.lt.u32.totalorder %s3049_s16, %s3044_s10 }
  0x26   : > { %p3053_p0 = scmp.lt.u32.totalorder %s3044_s10, %s3361_s19 }
  0x27   : > { %p3048_p9 = pneg %p3047_p8  ;;  %p3052_p13 = por %p3051_p11, %p3050_p10 }
  0x29   : > { %p3054_p1 = por %p3053_p0, %p3052_p13 }
  0x2b   : > { %p3055_p5 = pnand %p3054_p1, %p3048_p9 }
  0x2d   : > { %3058 = shalt.err (!%p3055_p5)
}
  0x2e   : > { %s3059_s12 = scalar_lea.vmem %s3363_s27, 2304  ;;  %s3198_s13 = smov [#allocation3]  }
  0x2f   : > { %p3060_p3 = scmp.ne.s32.totalorder %s3363_s27, %s3059_s12  ;;  %s3064_s18 = sshll.u32 %s3198_s13, 4  ;;  %s3065_s18 = int_to_ptr.vmem [resolvable:$false] %s3064_s18 }
  0x30   : > { %s3066_s29 = scalar_lea.vmem %s3065_s18, 4608  ;;  %p3067_p12 = scmp.lt.s32.totalorder %s3363_s27, %s3065_s18 }
  0x31   : > { %p3062_p8 = pnand %p3060_p3, %p3046_p6  ;;  %p3068_p10 = scmp.lt.s32.totalorder %s3066_s29, %s3059_s12 }
  0x33   : > { %p3063_p2 = pneg %p3062_p8  ;;  %p3069_p11 = por %p3068_p10, %p3067_p12 }
  0x35   : > { %p3070_p13 = pnand %p3069_p11, %p3063_p2 }
  0x37   : > { %3073 = shalt.err (!%p3070_p13)
}
  0x38   : > { %s3199_s10 = smov 64   ;;  %s3200_s22 = smov 4  }
  0x39   : > { %2887 = dma.hbm_to_vmem [thread:$0]  (!%p3354_p4), %s3361_s19, 2304, %s3363_s27, %s3366_s17, %s3199_s10, %s3199_s10, %s3200_s22  }
  0x3a   : > { %p270_p5 = scmp.lt.s32.totalorder %s3196_s11, 5  ;;  %p4529_p6 = scmp.ge.s32.totalorder %s3196_s11, 1 }
  0x3c   : > { %p271_p9 = pnand %p4529_p6, %p270_p5 }
  0x3d   : > { %s276_s16 = sand.u32 (!%p271_p9), 1, %s3172_s28  }
  0x3e   : > { %274 = sbr.rel (%p271_p9) target bundleno = 1071 (0x42f), region = 48  ;;  %s277_s12 = scalar_lea.sflag (!%p271_p9), [#allocation4], %s276_s16 }
  0x3f   : > { %s2879_s15 = smul.u32 (!%p271_p9), 144, %s276_s16 }
  0x41   : > { %s280_s13 = scalar_lea.vmem (!%p271_p9), [#allocation3], %s2879_s15 }
  0x45   : > { %3147 = dma.done.wait (%p3325_p7), %s277_s12, 2304  }
  0x46   : > { %3149 = vsyncadd (%p3325_p7), %s277_s12, 4294964992  ;;  %s308_s21 = sand.u32 1, %s3160_s25   ;;  %v2993_v0 = vld [vmem:[%s4501_s1] sm:$0xff]   ;;  %v2994_v1 = vld [vmem:[%s4501_s1 + $0x8] sm:$0xff]   ;;  %s2681_s10 = sshll.u32 %s3180_s30, 6  ;;  %vm613_vm0 = vcmask 261120  }
  0x47   : > { %s3405_s27 = sshll.u32 %s308_s21, 7  ;;  %2785 = vmatprep.subr.bf16.mxu0 %v2993_v0  ;;  %v2995_v2 = vld [vmem:[%s4501_s1 + $0x10] sm:$0xff]   ;;  %s3417_s16 = scalar_lea.vmem %s280_s13, %s2681_s10 [#allocation3]  ;;  %v2996_v3 = vld [vmem:[%s4501_s1 + $0x18] sm:$0xff]   ;;  %v2997_v5 = vld [vmem:[%s4501_s1 + $0x20] sm:$0xff]  }
  0x48   : > { %2786 = vmatpush3.bf16.msra.mxu0 %v2993_v0  ;;  %v3001_v4 = vld [vmem:[%s3417_s16] sm:$0xff]   ;;  %v2998_v6 = vld [vmem:[%s4501_s1 + $0x28] sm:$0xff]   ;;  %v2999_v7 = vld [vmem:[%s4501_s1 + $0x30] sm:$0xff]   ;;  %p2617_p7 = scmp.ne.s32.totalorder %s3180_s30, 0 }
  0x49   : > { %2787 = vmatprep.subr.bf16.mxu0 %v2994_v1  ;;  %2801 = vmatprep.mubr.bf16.mxu0 %v3001_v4  ;;  %v3000_v8 = vld [vmem:[%s4501_s1 + $0x38] sm:$0xff]   ;;  %v3436_v9 = vld [vmem:[%s3417_s16 + $0x8] sm:$0xff]   ;;  %v3439_v10 = vld [vmem:[%s3417_s16 + $0x10] sm:$0xff]  }
  0x4a   : > { %v3444_v11 = vld [vmem:[%s3417_s16 + $0x18] sm:$0xff]   ;;  %v3447_v12 = vld [vmem:[%s3417_s16 + $0x20] sm:$0xff]   ;;  %v3452_v13 = vld [vmem:[%s3417_s16 + $0x28] sm:$0xff]  }
  0x4b   : > { %v3455_v14 = vld [vmem:[%s3417_s16 + $0x30] sm:$0xff]   ;;  %v3460_v15 = vld [vmem:[%s3417_s16 + $0x38] sm:$0xff]   ;;  %v3463_v16 = vld [vmem:[%s3417_s16 + $0x40] sm:$0xff]  }
  0x4c   : > { %2788 = vmatpush3.bf16.msra.mxu0 %v2994_v1  ;;  %v3010_v17 = vld [vmem:[%s3417_s16 + $0x48] sm:$0xff]   ;;  %v3471_v18 = vld [vmem:[%s4504_s4] ss:$0 sm:$0xff]  ;;  %s3504_s16 = scalar_lea.vmem [#allocation6], %s3405_s27 }
  0x4d   : > { %2789 = vmatprep.subr.bf16.mxu0 %v2995_v2 }
  0x50   : > { %2790 = vmatpush3.bf16.msra.mxu0 %v2995_v2 }
  0x51   : > { %2791 = vmatprep.subr.bf16.mxu0 %v2996_v3 }
  0x54   : > { %2792 = vmatpush3.bf16.msra.mxu0 %v2996_v3 }
  0x55   : > { %2793 = vmatprep.subr.bf16.mxu0 %v2997_v5 }
  0x58   : > { %2794 = vmatpush3.bf16.msra.mxu0 %v2997_v5 }
  0x59   : > { %2795 = vmatprep.subr.bf16.mxu0 %v2998_v6 }
  0x5c   : > { %2796 = vmatpush3.bf16.msra.mxu0 %v2998_v6 }
  0x5d   : > { %2797 = vmatprep.subr.bf16.mxu0 %v2999_v7 }
  0x60   : > { %2798 = vmatpush3.bf16.msra.mxu0 %v2999_v7 }
  0x61   : > { %2799 = vmatprep.subr.bf16.mxu0 %v3000_v8 }
  0x64   : > { %2800 = vmatpush3.bf16.msra.mxu0 %v3000_v8 }
  0x67   : > { %2802 = vmatmul.mubr.bf16.vlgmr.msra.gmra.mrb[0].mxu0 %v3436_v9 }
  0x68   : > { %2805 = vmatprep.mubr.bf16.mxu0 %v3439_v10 }
  0x6f   : > { %2806 = vmatmul.mubr.bf16.gmra.mrb[4].mxu0 %v3444_v11 }
  0x70   : > { %2809 = vmatprep.mubr.bf16.mxu0 %v3447_v12 }
  0x77   : > { %2810 = vmatmul.mubr.bf16.gmra.mrb[8].mxu0 %v3452_v13 }
  0x78   : > { %2813 = vmatprep.mubr.bf16.mxu0 %v3455_v14 }
  0x7f   : > { %2814 = vmatmul.mubr.bf16.gmra.mrb[12].mxu0 %v3460_v15 }
  0x80   : > { %2817 = vmatprep.mubr.bf16.mxu0 %v3463_v16 }
  0x87   : > { %2818 = vmatmul.mubr.bf16.gmra.mrb[16].mxu0 %v3010_v17 }
 0x13a   : > { %v2803_v19 = vpop.f32.mrb[0].mxu0 }
 0x13b   : > { %v513_v20 = vadd.f32 %v2803_v19, %v3471_v18  ;;  %v504_v21 = vpop.f32.mrb[1].mxu0 }
 0x13c   : > { %v505_v22 = vadd.f32 %v3471_v18, %v504_v21  ;;  %v2804_v23 = vpop.f32.mrb[2].mxu0 }
 0x13d   : > { %v516_v24 = vadd.f32 %v2804_v23, %v3471_v18  ;;  %v507_v25 = vpop.f32.mrb[3].mxu0  ;;  %v585_v27 = vmax.f32 %v513_v20, 0.0 }
 0x13e   : > { %v508_v26 = vadd.f32 %v3471_v18, %v507_v25  ;;  %v583_v29 = vmax.f32 %v505_v22, 0.0 }
 0x13f   : > { %v586_v28 = vmax.f32 %v516_v24, 0.0 }
 0x140   : > { %v584_v30 = vmax.f32 %v508_v26, 0.0 }
 0x141   : > { %v604_v31 = vpack.c.bf16 %v586_v28, %v585_v27 }
 0x142   : > { %v603_v32 = vpack.c.bf16 %v584_v30, %v583_v29  ;;  %v2807_v33 = vpop.f32.mrb[4].mxu0 }
 0x143   : > { %615 = vst.msk [vmem:[#allocation2 + $0x10] sm:$0xff] %vm613_vm0, %v604_v31  ;;  %v529_v34 = vadd.f32 %v2807_v33, %v3471_v18  ;;  %v520_v35 = vpop.f32.mrb[5].mxu0 }
 0x144   : > { %614 = vst.msk [vmem:[#allocation2 + $0x8] sm:$0xff] %vm613_vm0, %v603_v32  ;;  %v521_v36 = vadd.f32 %v3471_v18, %v520_v35  ;;  %v2808_v37 = vpop.f32.mrb[6].mxu0 }
 0x145   : > { %v532_v38 = vadd.f32 %v2808_v37, %v3471_v18  ;;  %v523_v39 = vpop.f32.mrb[7].mxu0  ;;  %v589_v41 = vmax.f32 %v529_v34, 0.0  ;;  %v3201_v34 = vmov (!%p2617_p7), 0  }
 0x146   : > { %v524_v40 = vadd.f32 %v3471_v18, %v523_v39  ;;  %v587_v43 = vmax.f32 %v521_v36, 0.0  ;;  %628 = vst.msk [vmem:[#allocation2 + $0x8] sm:$0xff] (!%p2617_p7), %vm613_vm0, %v3201_v34 }
 0x147   : > { %v590_v42 = vmax.f32 %v532_v38, 0.0 }
 0x148   : > { %v588_v44 = vmax.f32 %v524_v40, 0.0 }
 0x149   : > { %v606_v45 = vpack.c.bf16 %v590_v42, %v589_v41 }
 0x14a   : > { %v605_v46 = vpack.c.bf16 %v588_v44, %v587_v43  ;;  %v2811_v47 = vpop.f32.mrb[8].mxu0 }
 0x14b   : > { %617 = vst.msk [vmem:[#allocation2 + $0x20] sm:$0xff] %vm613_vm0, %v606_v45  ;;  %v545_v48 = vadd.f32 %v2811_v47, %v3471_v18  ;;  %v536_v49 = vpop.f32.mrb[9].mxu0 }
 0x14c   : > { %616 = vst.msk [vmem:[#allocation2 + $0x18] sm:$0xff] %vm613_vm0, %v605_v46  ;;  %v537_v50 = vadd.f32 %v3471_v18, %v536_v49  ;;  %v2812_v51 = vpop.f32.mrb[10].mxu0 }
 0x14d   : > { %v548_v52 = vadd.f32 %v2812_v51, %v3471_v18  ;;  %v539_v53 = vpop.f32.mrb[11].mxu0  ;;  %v593_v55 = vmax.f32 %v545_v48, 0.0 }
 0x14e   : > { %v540_v54 = vadd.f32 %v3471_v18, %v539_v53  ;;  %v591_v57 = vmax.f32 %v537_v50, 0.0 }
 0x14f   : > { %v594_v56 = vmax.f32 %v548_v52, 0.0 }
 0x150   : > { %v592_v58 = vmax.f32 %v540_v54, 0.0 }
 0x151   : > { %v608_v59 = vpack.c.bf16 %v594_v56, %v593_v55 }
 0x152   : > { %v607_v60 = vpack.c.bf16 %v592_v58, %v591_v57  ;;  %v2815_v61 = vpop.f32.mrb[12].mxu0 }
 0x153   : > { %619 = vst.msk [vmem:[#allocation2 + $0x30] sm:$0xff] %vm613_vm0, %v608_v59  ;;  %v561_v62 = vadd.f32 %v2815_v61, %v3471_v18  ;;  %v552_v63 = vpop.f32.mrb[13].mxu0 }
 0x154   : > { %618 = vst.msk [vmem:[#allocation2 + $0x28] sm:$0xff] %vm613_vm0, %v607_v60  ;;  %v553_v0 = vadd.f32 %v3471_v18, %v552_v63  ;;  %v2816_v1 = vpop.f32.mrb[14].mxu0 }
 0x155   : > { %v564_v2 = vadd.f32 %v2816_v1, %v3471_v18  ;;  %v555_v3 = vpop.f32.mrb[15].mxu0  ;;  %v597_v5 = vmax.f32 %v561_v62, 0.0 }
 0x156   : > { %v556_v4 = vadd.f32 %v3471_v18, %v555_v3  ;;  %v595_v7 = vmax.f32 %v553_v0, 0.0 }
 0x157   : > { %v598_v6 = vmax.f32 %v564_v2, 0.0 }
 0x158   : > { %v596_v8 = vmax.f32 %v556_v4, 0.0 }
 0x159   : > { %v610_v17 = vpack.c.bf16 %v598_v6, %v597_v5 }
 0x15a   : > { %v609_v19 = vpack.c.bf16 %v596_v8, %v595_v7  ;;  %v2819_v20 = vpop.f32.mrb[16].mxu0 }
 0x15b   : > { %621 = vst.msk [vmem:[#allocation2 + $0x40] sm:$0xff] %vm613_vm0, %v610_v17  ;;  %v577_v21 = vadd.f32 %v2819_v20, %v3471_v18  ;;  %v568_v22 = vpop.f32.mrb[17].mxu0 }
 0x15c   : > { %620 = vst.msk [vmem:[#allocation2 + $0x38] sm:$0xff] %vm613_vm0, %v609_v19  ;;  %v569_v23 = vadd.f32 %v3471_v18, %v568_v22  ;;  %v2820_v24 = vpop.f32.mrb[18].mxu0 }
 0x15d   : > { %v580_v25 = vadd.f32 %v2820_v24, %v3471_v18  ;;  %v571_v26 = vpop.f32.mrb[19].mxu0  ;;  %v601_v28 = vmax.f32 %v577_v21, 0.0 }
 0x15e   : > { %v572_v27 = vadd.f32 %v3471_v18, %v571_v26  ;;  %v599_v30 = vmax.f32 %v569_v23, 0.0  ;;  %627 = sbr.rel (%p2617_p7) target bundleno = 357 (0x165), region = 56 }
 0x15f   : > { %v602_v29 = vmax.f32 %v580_v25, 0.0 }
 0x160   : > { %v600_v31 = vmax.f32 %v572_v27, 0.0 }
 0x161   : > { %v612_v32 = vpack.c.bf16 %v602_v29, %v601_v28 }
 0x162   : > { %v611_v33 = vpack.c.bf16 %v600_v31, %v599_v30 }
 0x163   : > { %623 = vst.msk [vmem:[#allocation2 + $0x50] sm:$0xff] %vm613_vm0, %v612_v32 }
 0x164   : > { %622 = vst.msk [vmem:[#allocation2 + $0x48] sm:$0xff] %vm613_vm0, %v611_v33 }
 0x165 PF: > { %p2618_p12 = scmp.ne.s32.totalorder %s3180_s30, 1 }
 0x166   : > { %v3202_v18 = vmov (!%p2618_p12), 0  }
 0x167   : > { %632 = sbr.rel (%p2618_p12) target bundleno = 366 (0x16e), region = 60  ;;  %633 = vst.msk [vmem:[#allocation2 + $0x50] sm:$0xff] (!%p2618_p12), %vm613_vm0, %v3202_v18 }
 0x16e PF: > { %v3510_v35 = vld [vmem:[#allocation2 + $0x10] sm:$0xff]  ;;  %v3512_v36 = vld [vmem:[#allocation2 + $0x18] sm:$0xff]  ;;  %vm972_vm1 = vsmask.f32 7424  ;;  %v3514_v37 = vld [vmem:[#allocation2 + $0x20] sm:$0xff]  ;;  %v634_v38 = vlaneseq  ;;  %s3203_s17 = smov 32  }
 0x16f   : > { %v1275_v39 = vshll.u32 %v3510_v35, 16  ;;  %v1279_v40 = vshrl.u32 %v3510_v35, 16  ;;  %v1283_v41 = vshll.u32 %v3512_v36, 16  ;;  %v3519_v42 = vld [vmem:[#allocation2 + $0x28] sm:$0xff]  ;;  %v1291_v43 = vshll.u32 %v3514_v37, 16  ;;  %v3019_v63 = vld [vmem:[%s4502_s2 + $0x40] sm:$0xff]  }
 0x170   : > { %v1295_v44 = vshrl.u32 %v3514_v37, 16  ;;  %v1299_v45 = vshll.u32 %v3519_v42, 16  ;;  %v3524_v46 = vld [vmem:[#allocation2 + $0x8] sm:$0xff]  ;;  %v1287_v47 = vshrl.u32 %v3512_v36, 16  ;;  %v3527_v48 = vshrl.u32 %v634_v38, 7  ;;  %s3204_s13 = smov 96   ;;  %2861 = vmatprep.subr.bf16.mxu1 %v3019_v63  ;;  %2701 = vmatprep.subr.bf16.mxu0 %v3019_v63 }
 0x171   : > { %v3529_v49 = vrot.slane %v1275_v39, 1  ;;  %v3531_v50 = vrot.slane %v1283_v41, 1  ;;  %v1293_v51 = vrot.slane %v1291_v43, 1  ;;  %v1268_v52 = vshll.u32 %v3524_v46, 16  ;;  %v3020_v22 = vld [vmem:[%s4502_s2] sm:$0xff]   ;;  %v3021_v27 = vld [vmem:[%s4502_s2 + $0x48] sm:$0xff]  }
 0x172   : > { %v3534_v53 = vrot.slane %v1299_v45, 1  ;;  %v1271_v54 = vshrl.u32 %v3524_v46, 16  ;;  %v637_v55 = vadd.s32 16, %v3527_v48  ;;  %v655_v56 = vand.u32 15, %v3527_v48  ;;  %2869 = vmatpush3.bf16.msra.mxu1 %v3020_v22  ;;  %2702 = vmatpush3.bf16.msra.mxu0 %v3020_v22  ;;  %v3023_v63 = vld [vmem:[%s4502_s2 + $0x50] sm:$0xff]   ;;  %s3207_s29 = smov 64  }
 0x173   : > { %v1281_v57 = vor.u32 %v1279_v40, %v3529_v49  ;;  %v1297_v58 = vor.u32 %v1295_v44, %v1293_v51  ;;  %v3540_v59 = vrot.slane %v1268_v52, 1  ;;  %v1289_v60 = vor.u32 %v1287_v47, %v3531_v50  ;;  %2862 = vmatprep.subr.bf16.mxu1 %v3021_v27  ;;  %2703 = vmatprep.subr.bf16.mxu0 %v3021_v27  ;;  %v3022_v52 = vld [vmem:[%s4502_s2 + $0x8] sm:$0xff]   ;;  %v3026_v33 = vld [vmem:[%s4502_s2 + $0x18] sm:$0xff]   ;;  %v3027_v39 = vld [vmem:[%s4502_s2 + $0x60] sm:$0xff]   ;;  %s2682_s27 = sshll.u32 %s3180_s30, 4  ;;  %s4439_s10 = scalar_lea.sflag [#allocation5], %s308_s21 }
 0x174   : > { %v669_v61 = vand.u32 15, %v637_v55  ;;  %vm3543_vm2 = vcmp.ge.s32.totalorder %v655_v56, 1  ;;  %vm3205_vm5 = vmmov 1   ;;  %v4516_v5 = vmov 0   ;;  %p4556_p4 = scmp.ne.s32.totalorder %s4525_s23, 0  ;;  %s3208_s22 = smov [#allocation6]  }
 0x175   : > { %v3552_v0 = vsel %vm972_vm1, %v1281_v57, %v3531_v50  ;;  %v3556_v1 = vsel %vm972_vm1, %v1297_v58, %v3534_v53  ;;  %v1273_v2 = vor.u32 %v1271_v54, %v3540_v59  ;;  %v3560_v3 = vsel %vm972_vm1, %v1289_v60, %v1293_v51  ;;  %vm916_vm3 = vmpackc.low %vm3543_vm2, %vm3543_vm2  ;;  %s3078_s15 = sshll.u32 %s3208_s22, 4  ;;  %s3079_s15 = int_to_ptr.vmem [resolvable:$false] %s3078_s15 }
 0x176   : > { %1334 = vrot.lane.b32.xlu0 %v3552_v0, %s3203_s17  ;;  %1511 = vrot.lane.b32.xlu1 %v3556_v1, %s3204_s13  ;;  %vm3569_vm4 = vcmp.ge.s32.totalorder %v669_v61, 1  ;;  %vm917_vm6 = vmpackc.low %vm3205_vm5, %vm3205_vm5  ;;  %v932_v6 = vsel %vm916_vm3, 65537, %v4516_v5  ;;  %v639_v7 = vadd.s32 32, %v3527_v48  ;;  %v636_v8 = vadd.s32 8, %v3527_v48  ;;  %s3080_s12 = scalar_lea.vmem %s3079_s15, 4096 }
 0x177   : > { %v1278_v17 = vsel %vm972_vm1, %v1273_v2, %v3529_v49  ;;  %vm918_vm7 = vmpackc.low %vm3569_vm4, %vm3569_vm4  ;;  %v3582_v19 = vsel %vm917_vm6, 65537, %v4516_v5  ;;  %v638_v20 = vadd.s32 24, %v3527_v48  ;;  %v640_v21 = vadd.s32 40, %v3527_v48  ;;  %2870 = vmatpush3.bf16.msra.mxu1 %v3022_v52  ;;  %v3024_v2 = vld [vmem:[%s4502_s2 + $0x10] sm:$0xff]   ;;  %2704 = vmatpush3.bf16.msra.mxu0 %v3022_v52 }
 0x178   : > { %v934_v23 = vsel %vm918_vm7, 65537, %v4516_v5  ;;  %v2619_v24 = vcombine.low %v932_v6, %v3582_v19  ;;  %v683_v25 = vand.u32 15, %v639_v7  ;;  %v662_v26 = vand.u32 15, %v636_v8  ;;  %2863 = vmatprep.subr.bf16.mxu1 %v3023_v63  ;;  %2705 = vmatprep.subr.bf16.mxu0 %v3023_v63 }
 0x179   : > { %v2620_v28 = vcombine.low %v934_v23, %v3582_v19  ;;  %v676_v29 = vand.u32 15, %v638_v20  ;;  %v690_v30 = vand.u32 15, %v640_v21  ;;  %vm1143_vm14 = vsmask.f32 256 }
 0x17a   : > { %1332 = vrot.lane.b32.xlu0 %v1278_v17, %s3203_s17  ;;  %1336 = vrot.lane.b32.xlu1 %v3560_v3, %s3203_s17  ;;  %v974_v31 = vshll.u32 %v2619_v24, 16  ;;  %v977_v32 = vshrl.u32 %v2619_v24, 16  ;;  %vm847_vm8 = vcmp.ge.s32.totalorder %v683_v25, 1  ;;  %vm3598_vm9 = vcmp.le.s32.totalorder %v662_v26, 14 }
 0x17b   : > { %v981_v34 = vshll.u32 %v2620_v28, 16  ;;  %vm920_vm10 = vmpackc.low %vm847_vm8, %vm847_vm8  ;;  %v985_v18 = vshrl.u32 %v2620_v28, 16  ;;  %vm3602_vm11 = vcmp.le.s32.totalorder %v676_v29, 14  ;;  %vm3606_vm12 = vcmp.le.s32.totalorder %v690_v30, 14  ;;  %v3025_v29 = vld [vmem:[%s4502_s2 + $0x58] sm:$0xff]   ;;  %2871 = vmatpush3.bf16.msra.mxu1 %v3024_v2  ;;  %2706 = vmatpush3.bf16.msra.mxu0 %v3024_v2 }
 0x17c   : > { %v3610_v40 = vrot.slane %v974_v31, 1  ;;  %v936_v41 = vsel %vm920_vm10, 65537, %v4516_v5  ;;  %vm1088_vm13 = vmpackc.low %vm3598_vm9, %vm3598_vm9  ;;  %v642_v43 = vadd.s32 56, %v3527_v48  ;;  %v641_v51 = vadd.s32 48, %v3527_v48  ;;  %2864 = vmatprep.subr.bf16.mxu1 %v3025_v29  ;;  %2707 = vmatprep.subr.bf16.mxu0 %v3025_v29 }
 0x17d   : > { %v983_v44 = vrot.slane %v981_v34, 1  ;;  %v3618_v45 = vcombine.low %v936_v41, %v3582_v19  ;;  %vm1090_vm15 = vmpackc.low %vm3602_vm11, %vm3602_vm11  ;;  %v1104_v47 = vsel %vm1088_vm13, 65537, %v4516_v5  ;;  %vm1357_vm8 = vcmask 1046528  }
 0x17e   : > { %1509 = vrot.lane.b32.xlu0 %v3560_v3, %s3204_s13  ;;  %v979_v54 = vor.u32 %v977_v32, %v3610_v40  ;;  %vm1092_vm2 = vmpackc.low %vm3606_vm12, %vm3606_vm12  ;;  %v1106_v55 = vsel %vm1090_vm15, 65537, %v4516_v5  ;;  %v2627_v56 = vcombine.low %v3582_v19, %v1104_v47  ;;  %v704_v57 = vand.u32 15, %v642_v43 }
 0x17f   : > { %v987_v58 = vor.u32 %v985_v18, %v983_v44  ;;  %v989_v60 = vshll.u32 %v3618_v45, 16  ;;  %v1108_v61 = vsel %vm1092_vm2, 65537, %v4516_v5  ;;  %v2628_v62 = vcombine.low %v3582_v19, %v1106_v55  ;;  %2872 = vmatpush3.bf16.msra.mxu1 %v3026_v33  ;;  %2708 = vmatpush3.bf16.msra.mxu0 %v3026_v33  ;;  %v3754_v33 = vld [vmem:[#allocation2 + $0x30] sm:$0xff] }
 0x180   : > { %v3646_v4 = vsel %vm972_vm1, %v979_v54, %v983_v44  ;;  %v2629_v6 = vcombine.low %v3582_v19, %v1108_v61  ;;  %v1145_v7 = vshrl.u32 %v2627_v56, 16  ;;  %v1148_v8 = vshll.u32 %v2627_v56, 16  ;;  %v3028_v56 = vld [vmem:[%s4502_s2 + $0x20] sm:$0xff]   ;;  %2865 = vmatprep.subr.bf16.mxu1 %v3027_v39  ;;  %2709 = vmatprep.subr.bf16.mxu0 %v3027_v39  ;;  %v3032_v39 = vld [vmem:[%s4502_s2 + $0x30] sm:$0xff]  }
 0x181   : > { %vm1037_vm3 = vcmp.ne.s16.totalorder %v3646_v4, 0  ;;  %v3650_v17 = vrot.slane %v989_v60, 1  ;;  %v1152_v20 = vshrl.u32 %v2628_v62, 16  ;;  %v1155_v21 = vshll.u32 %v2628_v62, 16  ;;  %v3029_v60 = vld [vmem:[%s4502_s2 + $0x68] sm:$0xff]  }
 0x182   : > { %v1228_v22 = vsel %vm1037_vm3, %v3510_v35, 0  ;;  %v1249_v23 = vsel %vm1037_vm3, %v3512_v36, 0  ;;  %v1147_v24 = vrot.slane %v1145_v7, 7  ;;  %v1160_v25 = vshrl.u32 %v2629_v6, 16 }
 0x183   : > { %1404 = vrot.lane.b32.xlu1 %v1228_v22, %s3204_s13  ;;  %1483 = vrot.lane.b32.xlu0 %v1249_v23, %s3207_s29  ;;  %v3662_v26 = vsel %vm972_vm1, %v987_v58, %v3650_v17  ;;  %v1154_v27 = vrot.slane %v1152_v20, 7  ;;  %v1163_v28 = vshll.u32 %v2629_v6, 16  ;;  %vm866_vm4 = vcmp.le.s32.totalorder %v704_v57, 14  ;;  %v3030_v22 = vld [vmem:[%s4502_s2 + $0x28] sm:$0xff]  }
 0x184   : > { %vm1038_vm5 = vcmp.ne.s16.totalorder %v3662_v26, 0  ;;  %v3668_v30 = vrot.slane %v1160_v25, 7  ;;  %v3670_v31 = vor.u32 %v1148_v8, %v1147_v24  ;;  %vm1094_vm6 = vmpackc.low %vm866_vm4, %vm866_vm4  ;;  %v697_v32 = vand.u32 15, %v641_v51  ;;  %2873 = vmatpush3.bf16.msra.mxu1 %v3028_v56  ;;  %2710 = vmatpush3.bf16.msra.mxu0 %v3028_v56  ;;  %v3031_v25 = vld [vmem:[%s4502_s2 + $0x70] sm:$0xff]   ;;  %v3033_v56 = vld [vmem:[%s4502_s2 + $0x78] sm:$0xff]  }
 0x185   : > { %v1250_v34 = vsel %vm1038_vm5, %v3514_v37, 0  ;;  %v1157_v18 = vor.u32 %v1155_v21, %v1154_v27  ;;  %v1110_v38 = vsel %vm1094_vm6, 65537, %v4516_v5  ;;  %v1229_v47 = vsel %vm1038_vm5, %v3512_v36, 0  ;;  %2866 = vmatprep.subr.bf16.mxu1 %v3029_v60  ;;  %2711 = vmatprep.subr.bf16.mxu0 %v3029_v60 }
 0x186   : > { %v1165_v41 = vor.u32 %v1163_v28, %v3668_v30  ;;  %vm1207_vm7 = vcmp.ne.s16.totalorder %v3670_v31, 0  ;;  %v2630_v43 = vcombine.low %v3582_v19, %v1110_v38  ;;  %vm3692_vm9 = vcmp.ge.s32.totalorder %v697_v32, 1 }
 0x187   : > { %1485 = vrot.lane.b32.xlu1 %v1250_v34, %s3207_s29  ;;  %v3687_v44 = vsel %vm1143_vm14, %v1147_v24, %v1157_v18  ;;  %v3703_v54 = vsel %vm1207_vm7, %v3510_v35, 0  ;;  %v3724_v63 = vsel %vm1207_vm7, %v3524_v46, 0  ;;  %vm922_vm12 = vmpackc.low %vm3692_vm9, %vm3692_vm9  ;;  %v644_v18 = vadd.s32 72, %v3527_v48 }
 0x188   : > { %v3697_v52 = vsel %vm1143_vm14, %v1154_v27, %v1165_v41  ;;  %vm1208_vm10 = vcmp.ne.s16.totalorder %v3687_v44, 0  ;;  %v1168_v55 = vshrl.u32 %v2630_v43, 16  ;;  %v1437_v6 = vrot.slane %v3703_v54, 1  ;;  %2874 = vmatpush3.bf16.msra.mxu1 %v3030_v22  ;;  %2712 = vmatpush3.bf16.msra.mxu0 %v3030_v22 }
 0x189   : > { %vm1209_vm11 = vcmp.ne.s16.totalorder %v3697_v52, 0  ;;  %v1238_v57 = vsel %vm1208_vm10, %v3512_v36, 0  ;;  %v1217_v58 = vsel %vm1208_vm10, %v3510_v35, 0  ;;  %v993_v35 = vshrl.u32 %v3618_v45, 16  ;;  %2867 = vmatprep.subr.bf16.mxu1 %v3031_v25  ;;  %2713 = vmatprep.subr.bf16.mxu0 %v3031_v25 }
 0x18a   : > { %v1239_v61 = vsel %vm1209_vm11, %v3514_v37, 0  ;;  %v1438_v62 = vrot.slane %v1238_v57, 1  ;;  %v1218_v7 = vsel %vm1209_vm11, %v3512_v36, 0  ;;  %v1359_v8 = vrot.slane %v1217_v58, 1 }
 0x18b   : > { %v1440_v2 = vrot.slane %v1239_v61, 1  ;;  %1406 = vrot.lane.b32.xlu1 %v1229_v47, %s3204_s13  ;;  %v1361_v20 = vrot.slane %v1218_v7, 1  ;;  %v3735_v21 = vrot.slane %v1168_v55, 7  ;;  %v1171_v46 = vshll.u32 %v2630_v43, 16  ;;  %v3034_v7 = vld [vmem:[%s4502_s2 + $0x38] sm:$0xff]  }
 0x18c   : > { %v1358_v23 = vrot.slane %v3724_v63, 1  ;;  %v938_v24 = vsel %vm922_vm12, 65537, %v4516_v5  ;;  %v1439_v32 = vsel %vm1357_vm8, %v1437_v6, %v1438_v62  ;;  %v995_v34 = vor.u32 %v993_v35, %v3650_v17  ;;  %2875 = vmatpush3.bf16.msra.mxu1 %v3032_v39  ;;  %2714 = vmatpush3.bf16.msra.mxu0 %v3032_v39 }
 0x18d   : > { %v1441_v45 = vsel %vm1357_vm8, %v1438_v62, %v1440_v2  ;;  %v1362_v27 = vsel %vm1357_vm8, %v1359_v8, %v1361_v20  ;;  %v1173_v28 = vor.u32 %v1171_v46, %v3735_v21  ;;  %v2622_v29 = vcombine.low %v938_v24, %v3582_v19  ;;  %2868 = vmatprep.subr.bf16.mxu1 %v3033_v56 }
 0x18e   : > { %1458 = vrot.lane.b32.xlu0 %v1441_v45, %s3203_s17  ;;  %v643_v38 = vadd.s32 64, %v3527_v48  ;;  %v1360_v43 = vsel %vm1357_vm8, %v1358_v23, %v1359_v8  ;;  %v1303_v51 = vshrl.u32 %v3519_v42, 16  ;;  %v718_v17 = vand.u32 15, %v644_v18  ;;  %2715 = vmatprep.subr.bf16.mxu0 %v3033_v56 }
 0x18f   : > { %1379 = vrot.lane.b32.xlu1 %v1362_v27, %s3207_s29  ;;  %v1174_v41 = vsel %vm1143_vm14, %v3668_v30, %v1173_v28  ;;  %v997_v47 = vshll.u32 %v2622_v29, 16  ;;  %v1307_v35 = vshll.u32 %v3754_v33, 16  ;;  %v645_v39 = vadd.s32 80, %v3527_v48 }
 0x190   : > { %vm1210_vm13 = vcmp.ne.s16.totalorder %v1174_v41, 0  ;;  %v711_v55 = vand.u32 15, %v643_v38  ;;  %vm868_vm15 = vcmp.le.s32.totalorder %v718_v17, 14  ;;  %v1305_v24 = vor.u32 %v1303_v51, %v3534_v53  ;;  %2876 = vmatpush3.bf16.msra.mxu1 %v3034_v7  ;;  %2716 = vmatpush3.bf16.msra.mxu0 %v3034_v7 }
 0x191   : > { %v3773_v30 = vsel %vm1210_vm13, %v3519_v42, 0  ;;  %v3776_v57 = vsel %vm1210_vm13, %v3754_v33, 0  ;;  %v999_v58 = vrot.slane %v997_v47, 1  ;;  %v3779_v60 = vsel %vm1210_vm13, %v3514_v37, 0  ;;  %vm1096_vm6 = vmpackc.low %vm868_vm15, %vm868_vm15 }
 0x192   : > { %1456 = vrot.lane.b32.xlu0 %v1439_v32, %s3203_s17  ;;  %v1442_v61 = vrot.slane %v3773_v30, 1  ;;  %v1363_v62 = vrot.slane %v3779_v60, 1  ;;  %vm3791_vm2 = vcmp.ge.s32.totalorder %v711_v55, 1  ;;  %v1112_v25 = vsel %vm1096_vm6, 65537, %v4516_v5 }
 0x193   : > { %1377 = vrot.lane.b32.xlu1 %v1360_v43, %s3207_s29  ;;  %v3789_v8 = vsel %vm972_vm1, %v995_v34, %v999_v58  ;;  %vm924_vm9 = vmpackc.low %vm3791_vm2, %vm3791_vm2  ;;  %v2631_v28 = vcombine.low %v3582_v19, %v1112_v25  ;;  %v646_v38 = vadd.s32 88, %v3527_v48  ;;  %v725_v55 = vand.u32 15, %v645_v39 }
 0x194   : > { %v1443_v22 = vsel %vm1357_vm8, %v1440_v2, %v1442_v61  ;;  %vm1039_vm4 = vcmp.ne.s16.totalorder %v3789_v8, 0  ;;  %v1364_v45 = vsel %vm1357_vm8, %v1361_v20, %v1363_v62  ;;  %v1001_v2 = vshrl.u32 %v2622_v29, 16 }
 0x195   : > { %v1251_v27 = vsel %vm1039_vm4, %v3519_v42, 0  ;;  %v1309_v20 = vrot.slane %v1307_v35, 1  ;;  %v940_v32 = vsel %vm924_vm9, 65537, %v4516_v5  ;;  %v1230_v53 = vsel %vm1039_vm4, %v3514_v37, 0 }
 0x196   : > { %1460 = vrot.lane.b32.xlu0 %v1443_v22, %s3203_s17  ;;  %v3818_v34 = vcombine.low %v940_v32, %v3582_v19  ;;  %v1176_v29 = vshrl.u32 %v2631_v28, 16  ;;  %v1179_v18 = vshll.u32 %v2631_v28, 16  ;;  %v1003_v41 = vor.u32 %v1001_v2, %v999_v58  ;;  %v3833_v22 = vld [vmem:[#allocation2 + $0x38] sm:$0xff] }
 0x197   : > { %1381 = vrot.lane.b32.xlu1 %v1364_v45, %s3207_s29  ;;  %v3825_v47 = vsel %vm972_vm1, %v1305_v24, %v1309_v20  ;;  %v732_v17 = vand.u32 15, %v646_v38  ;;  %v1311_v35 = vshrl.u32 %v3754_v33, 16  ;;  %v648_v7 = vadd.s32 104, %v3527_v48 }
 0x198   : > { %v1005_v43 = vshll.u32 %v3818_v34, 16  ;;  %v1178_v51 = vrot.slane %v1176_v29, 7  ;;  %v647_v46 = vadd.s32 96, %v3527_v48  ;;  %vm3835_vm13 = vcmp.ge.s32.totalorder %v725_v55, 1 }
 0x199   : > { %vm870_vm12 = vcmp.le.s32.totalorder %v732_v17, 14  ;;  %vm926_vm2 = vmpackc.low %vm3835_vm13, %vm3835_vm13  ;;  %v1313_v32 = vor.u32 %v1311_v35, %v1309_v20  ;;  %v3903_v35 = vld [vmem:[#allocation2 + $0x40] sm:$0xff] }
 0x19a   : > { %1487 = vrot.lane.b32.xlu0 %v1251_v27, %s3207_s29  ;;  %v3828_v56 = vrot.slane %v1005_v43, 1  ;;  %v1181_v58 = vor.u32 %v1179_v18, %v1178_v51  ;;  %vm1098_vm15 = vmpackc.low %vm870_vm12, %vm870_vm12  ;;  %v746_v27 = vand.u32 15, %v648_v7  ;;  %v739_v28 = vand.u32 15, %v647_v46 }
 0x19b   : > { %1408 = vrot.lane.b32.xlu1 %v1230_v53, %s3204_s13  ;;  %v1114_v2 = vsel %vm1098_vm15, 65537, %v4516_v5  ;;  %v1315_v53 = vshll.u32 %v3833_v22, 16  ;;  %v942_v39 = vsel %vm926_vm2, 65537, %v4516_v5 }
 0x19c   : > { %v3843_v24 = vsel %vm972_vm1, %v1003_v41, %v3828_v56  ;;  %v1182_v25 = vsel %vm1143_vm14, %v3735_v21, %v1181_v58  ;;  %v2632_v29 = vcombine.low %v3582_v19, %v1114_v2  ;;  %v2624_v55 = vcombine.low %v942_v39, %v3582_v19 }
 0x19d   : > { %vm1211_vm6 = vcmp.ne.s16.totalorder %v1182_v25, 0  ;;  %vm1040_vm9 = vcmp.ne.s16.totalorder %v3843_v24, 0  ;;  %vm872_vm12 = vcmp.le.s32.totalorder %v746_v27, 14  ;;  %vm3869_vm13 = vcmp.ge.s32.totalorder %v739_v28, 1 }
 0x19e   : > { %1513 = vrot.lane.b32.xlu0 %v3825_v47, %s3204_s13  ;;  %v3856_v18 = vsel %vm1211_vm6, %v3754_v33, 0  ;;  %v3859_v21 = vsel %vm1211_vm6, %v3833_v22, 0  ;;  %v3862_v38 = vsel %vm1211_vm6, %v3519_v42, 0  ;;  %v1184_v43 = vshrl.u32 %v2632_v29, 16  ;;  %vm1100_vm15 = vmpackc.low %vm872_vm12, %vm872_vm12 }
 0x19f   : > { %1338 = vrot.lane.b32.xlu1 %v3556_v1, %s3203_s17  ;;  %v4515_v41 = vrot.slane %v3856_v18, 1  ;;  %v4514_v20 = vrot.slane %v3862_v38, 1  ;;  %v1187_v17 = vshll.u32 %v2632_v29, 16  ;;  %v1317_v58 = vrot.slane %v1315_v53, 1  ;;  %vm928_vm2 = vmpackc.low %vm3869_vm13, %vm3869_vm13 }
 0x1a0   : > { %v1186_v45 = vrot.slane %v1184_v43, 7  ;;  %v1252_v25 = vsel %vm1040_vm9, %v3754_v33, 0  ;;  %v1231_v30 = vsel %vm1040_vm9, %v3519_v42, 0  ;;  %v1116_v60 = vsel %vm1100_vm15, 65537, %v4516_v5 }
 0x1a1   : > { %v1445_v7 = vsel %vm1357_vm8, %v1442_v61, %v4515_v41  ;;  %v1366_v46 = vsel %vm1357_vm8, %v1363_v62, %v4514_v20  ;;  %v1013_v61 = vshll.u32 %v2624_v55, 16  ;;  %v2633_v2 = vcombine.low %v3582_v19, %v1116_v60 }
 0x1a2   : > { %1462 = vrot.lane.b32.xlu0 %v1445_v7, %s3203_s17  ;;  %v1189_v62 = vor.u32 %v1187_v17, %v1186_v45  ;;  %v944_v27 = vsel %vm928_vm2, 65537, %v4516_v5  ;;  %v1017_v28 = vshrl.u32 %v2624_v55, 16  ;;  %v650_v7 = vadd.s32 120, %v3527_v48 }
 0x1a3   : > { %1383 = vrot.lane.b32.xlu1 %v1366_v46, %s3207_s29  ;;  %v3898_v53 = vcombine.low %v944_v27, %v3582_v19  ;;  %v1015_v39 = vrot.slane %v1013_v61, 1  ;;  %v1192_v43 = vshrl.u32 %v2633_v2, 16  ;;  %v649_v55 = vadd.s32 112, %v3527_v48  ;;  %v1225_v48 = vld [vmem:[#allocation2 + $0x8] sm:$0x80] }
 0x1a4   : > { %v1190_v29 = vsel %vm1143_vm14, %v1178_v51, %v1189_v62  ;;  %v3909_v46 = vsel %vm972_vm1, %v1313_v32, %v1317_v58  ;;  %v1195_v61 = vshll.u32 %v2633_v2, 16  ;;  %vm1036_vm12 = vcmp.ne.s16.totalorder %v3610_v40, 0 }
 0x1a5   : > { %vm1212_vm6 = vcmp.ne.s16.totalorder %v1190_v29, 0  ;;  %v1021_v17 = vshll.u32 %v3898_v53, 16  ;;  %v1319_v60 = vshrl.u32 %v3833_v22, 16  ;;  %v1323_v62 = vshll.u32 %v3903_v35, 16 }
 0x1a6   : > { %1489 = vrot.lane.b32.xlu0 %v1252_v25, %s3207_s29  ;;  %v3913_v51 = vsel %vm1212_vm6, %v3903_v35, 0  ;;  %v1019_v25 = vor.u32 %v1017_v28, %v1015_v39  ;;  %v3918_v27 = vrot.slane %v1192_v43, 7  ;;  %v1009_v32 = vshrl.u32 %v3818_v34, 16 }
 0x1a7   : > { %1410 = vrot.lane.b32.xlu1 %v1231_v30, %s3204_s13  ;;  %v1246_v30 = vld [vmem:[#allocation2 + $0x10] sm:$0x80]  ;;  %v1023_v20 = vrot.slane %v1021_v17, 1  ;;  %v760_v2 = vand.u32 15, %v650_v7  ;;  %v753_v28 = vand.u32 15, %v649_v55  ;;  %v3928_v41 = vsel %vm1208_vm10, %v3514_v37, 0 }
 0x1a8   : > { %v1197_v43 = vor.u32 %v1195_v61, %v3918_v27  ;;  %v3937_v5 = vsel %vm1209_vm11, %v3519_v42, 0  ;;  %v1227_v37 = vsel %vm1036_vm12, %v1225_v48, 0  ;;  %v1321_v44 = vor.u32 %v1319_v60, %v1317_v58  ;;  %v3959_v58 = vld [vmem:[#allocation2 + $0x48] sm:$0xff] }
 0x1a9   : > { %v3932_v17 = vsel %vm972_vm1, %v1019_v25, %v1023_v20  ;;  %vm874_vm13 = vcmp.le.s32.totalorder %v760_v2, 14  ;;  %vm3941_vm15 = vcmp.ge.s32.totalorder %v753_v28, 1  ;;  %v1325_v7 = vrot.slane %v1323_v62, 1 }
 0x1aa   : > { %1515 = vrot.lane.b32.xlu0 %v3909_v46, %s3204_s13  ;;  %v1198_v55 = vsel %vm1143_vm14, %v1186_v45, %v1197_v43  ;;  %vm1102_vm10 = vmpackc.low %vm874_vm13, %vm874_vm13  ;;  %v3956_v42 = vsel %vm1212_vm6, %v3833_v22, 0  ;;  %v1011_v52 = vor.u32 %v1009_v32, %v3828_v56  ;;  %v4550_v61 = vmov 0  }
 0x1ab   : > { %1330 = vrot.lane.b32.xlu1 %v3540_v59, %s3203_s17  ;;  %v1248_v59 = vsel %vm1036_vm12, %v1246_v30, 0  ;;  %vm1213_vm11 = vcmp.ne.s16.totalorder %v1198_v55, 0  ;;  %v1118_v45 = vsel %vm1102_vm10, 65537, %v4550_v61  ;;  %vm930_vm2 = vmpackc.low %vm3941_vm15, %vm3941_vm15  ;;  %v3967_v54 = vsel %vm1212_vm6, %v3754_v33, 0  ;;  %v3980_v30 = vld [vmem:[%s4502_s2 + $0x80] sm:$0xff]  }
 0x1ac   : > { %v3971_v63 = vsel %vm1213_vm11, %v3959_v58, 0  ;;  %v1535_v56 = vrot.slane %v3928_v41, 1  ;;  %v946_v25 = vsel %vm930_vm2, 65537, %v4550_v61  ;;  %v1537_v29 = vrot.slane %v3937_v5, 1  ;;  %2821 = vmatprep.subr.bf16.mxu0 %v3980_v30 }
 0x1ad   : > { %v3984_v48 = vcombine.low %v946_v25, %v3582_v19  ;;  %v1539_v32 = vrot.slane %v3776_v57, 1  ;;  %v3991_v2 = vsel %vm972_vm1, %v1011_v52, %v1015_v39  ;;  %v1367_v28 = vrot.slane %v3967_v54, 1 }
 0x1ae   : > { %1454 = vrot.lane.b32.xlu0 %v1437_v6, %s3203_s17  ;;  %v2634_v6 = vcombine.low %v3582_v19, %v1118_v45  ;;  %v3995_v43 = vsel %vm972_vm1, %v1321_v44, %v1325_v7  ;;  %v1236_v45 = vld [vmem:[#allocation2 + $0x50] sm:$0x1]  ;;  %v1243_v39 = vsel %vm1213_vm11, %v3903_v35, 0  ;;  %vm1041_vm6 = vcmp.ne.s16.totalorder %v3991_v2, 0 }
 0x1af   : > { %1375 = vrot.lane.b32.xlu1 %v1358_v23, %s3207_s29  ;;  %v1025_v23 = vshrl.u32 %v3898_v53, 16  ;;  %v1446_v53 = vrot.slane %v3956_v42, 1  ;;  %v1029_v61 = vshll.u32 %v3984_v48, 16  ;;  %v4551_v52 = vrot.slane %v3856_v18, 1 }
 0x1b0   : > { %v1200_v60 = vshrl.u32 %v2634_v6, 16  ;;  %v1203_v62 = vshll.u32 %v2634_v6, 16  ;;  %v1054_v6 = vld [vmem:[#allocation2 + $0x48] sm:$0x1]  ;;  %v1253_v55 = vsel %vm1041_vm6, %v3833_v22, 0  ;;  %vm1042_vm10 = vcmp.ne.s16.totalorder %v3932_v17, 0 }
 0x1b1   : > { %v1027_v19 = vor.u32 %v1025_v23, %v1023_v20  ;;  %v4008_v20 = vrot.slane %v1029_v61, 1  ;;  %v1447_v54 = vsel %vm1357_vm8, %v4551_v52, %v1446_v53  ;;  %v4552_v23 = vrot.slane %v3862_v38, 1 }
 0x1b2   : > { %1481 = vrot.lane.b32.xlu0 %v1248_v59, %s3207_s29  ;;  %v3997_v34 = vrot.slane %v1200_v60, 7  ;;  %v1541_v59 = vrot.slane %v3859_v21, 1  ;;  %v1448_v61 = vrot.slane %v1243_v39, 1 }
 0x1b3   : > { %1402 = vrot.lane.b32.xlu1 %v1227_v37, %s3204_s13  ;;  %v1327_v37 = vshrl.u32 %v3903_v35, 16  ;;  %v1368_v25 = vsel %vm1357_vm8, %v4552_v23, %v1367_v28  ;;  %v4033_v52 = vsel %vm972_vm1, %v1027_v19, %v4008_v20 }
 0x1b4   : > { %v1205_v44 = vor.u32 %v1203_v62, %v3997_v34  ;;  %vm1215_vm13 = vcmp.ne.s16.totalorder %v3997_v34, 0 }
 0x1b5   : > { %v1245_v60 = vsel %vm1215_vm13, %v1236_v45, 0  ;;  %v1224_v62 = vsel %vm1215_vm13, %v1054_v6, 0  ;;  %v4035_v38 = vor.u32 %v1327_v37, %v1325_v7  ;;  %v1543_v6 = vrot.slane %v3913_v51, 1 }
 0x1b6   : > { %1507 = vrot.lane.b32.xlu0 %v3531_v50, %s3204_s13  ;;  %v1222_v50 = vsel %vm1213_vm11, %v3833_v22, 0  ;;  %v4029_v18 = vsel %vm1143_vm14, %v3918_v27, %v1205_v44  ;;  %v1452_v45 = vrot.slane %v1245_v60, 1  ;;  %v1373_v23 = vrot.slane %v1224_v62, 1 }
 0x1b7   : > { %1340 = vrot.lane.b32.xlu1 %v3825_v47, %s3203_s17  ;;  %vm1214_vm15 = vcmp.ne.s16.totalorder %v4029_v18, 0  ;;  %v1232_v51 = vsel %vm1041_vm6, %v3754_v33, 0  ;;  %v1369_v7 = vrot.slane %v1222_v50, 1  ;;  %v1449_v44 = vsel %vm1357_vm8, %v1446_v53, %v1448_v61 }
 0x1b8   : > { %v1244_v27 = vsel %vm1214_vm15, %v3959_v58, 0  ;;  %v1223_v19 = vsel %vm1214_vm15, %v3903_v35, 0  ;;  %v1258_v60 = vsel %vm1207_vm7, %v3512_v36, 0  ;;  %vm1043_vm7 = vcmp.ne.s16.totalorder %v4033_v52, 0 }
 0x1b9   : > { %v1450_v39 = vrot.slane %v1244_v27, 1  ;;  %v1371_v37 = vrot.slane %v1223_v19, 1  ;;  %v1534_v31 = vrot.slane %v1258_v60, 1  ;;  %v4078_v19 = vsel %vm1042_vm10, %v3754_v33, 0 }
 0x1ba   : > { %1464 = vrot.lane.b32.xlu0 %v1447_v54, %s3203_s17  ;;  %v1538_v54 = vsel %vm1357_vm8, %v1535_v56, %v1537_v29  ;;  %v1542_v33 = vsel %vm1357_vm8, %v1539_v32, %v1541_v59 }
 0x1bb   : > { %1385 = vrot.lane.b32.xlu1 %v1368_v25, %s3207_s29  ;;  %v4064_v25 = vsel %vm1357_vm8, %v1448_v61, %v1450_v39  ;;  %v4067_v62 = vsel %vm1357_vm8, %v1369_v7, %v1371_v37  ;;  %v4070_v53 = vsel %vm1357_vm8, %v1450_v39, %v1452_v45  ;;  %v4073_v50 = vsel %vm1357_vm8, %v1371_v37, %v1373_v23 }
 0x1bc   : > { %v1769_v36 = vshrl.u32 %v1538_v54, 16  ;;  %v1772_v27 = vshll.u32 %v1538_v54, 16  ;;  %v1370_v45 = vsel %vm1357_vm8, %v1367_v28, %v1369_v7  ;;  %v1540_v23 = vsel %vm1357_vm8, %v1537_v29, %v1539_v32 }
 0x1bd   : > { %v1791_v37 = vshrl.u32 %v1540_v23, 16  ;;  %v1794_v60 = vshll.u32 %v1540_v23, 16  ;;  %v1813_v54 = vshrl.u32 %v1542_v33, 16  ;;  %v1816_v61 = vshll.u32 %v1542_v33, 16 }
 0x1be   : > { %1491 = vrot.lane.b32.xlu0 %v1253_v55, %s3207_s29  ;;  %v1536_v55 = vsel %vm1357_vm8, %v1534_v31, %v1535_v56  ;;  %v1771_v39 = vrot.slane %v1769_v36, 7  ;;  %v1544_v56 = vsel %vm1357_vm8, %v1541_v59, %v1543_v6  ;;  %v4553_v32 = vrot.slane %v3971_v63, 1 }
 0x1bf   : > { %1412 = vrot.lane.b32.xlu1 %v1232_v51, %s3204_s13  ;;  %v1743_v51 = vshrl.u32 %v1534_v31, 16  ;;  %v1747_v28 = vshrl.u32 %v1536_v55, 16  ;;  %v1750_v7 = vshll.u32 %v1536_v55, 16  ;;  %v1793_v29 = vrot.slane %v1791_v37, 7 }
 0x1c0   : > { %v1774_v42 = vor.u32 %v1772_v27, %v1771_v39  ;;  %v1815_v41 = vrot.slane %v1813_v54, 7  ;;  %v1546_v31 = vsel %vm1357_vm8, %v1543_v6, %v4553_v32  ;;  %v1835_v27 = vshrl.u32 %v1544_v56, 16  ;;  %v1257_v32 = vld [vmem:[#allocation2 + $0x58] sm:$0x1] }
 0x1c1   : > { %v1745_v5 = vrot.slane %v1743_v51, 7  ;;  %v1749_v57 = vrot.slane %v1747_v28, 7  ;;  %v1796_v36 = vor.u32 %v1794_v60, %v1793_v29  ;;  %v1857_v23 = vshrl.u32 %v1546_v31, 16 }
 0x1c2   : > { %1517 = vrot.lane.b32.xlu0 %v3995_v43, %s3204_s13  ;;  %v1818_v51 = vor.u32 %v1816_v61, %v1815_v41  ;;  %v1838_v37 = vshll.u32 %v1544_v56, 16  ;;  %v1837_v21 = vrot.slane %v1835_v27, 7  ;;  %v1860_v54 = vshll.u32 %v1546_v31, 16 }
 0x1c3   : > { %1342 = vrot.lane.b32.xlu1 %v3909_v46, %s3203_s17  ;;  %v1752_v33 = vor.u32 %v1750_v7, %v1749_v57  ;;  %v4109_v55 = vsel %vm1143_vm14, %v1749_v57, %v1774_v42  ;;  %v4112_v28 = vsel %vm1143_vm14, %v1771_v39, %v1796_v36  ;;  %v1859_v59 = vrot.slane %v1857_v23, 7 }
 0x1c4   : > { %v4554_v6 = vshll.u32 %v3959_v58, 16  ;;  %v4122_v42 = vsel %vm1143_vm14, %v1793_v29, %v1818_v51  ;;  %v4127_v61 = vsel %vm1043_vm7, %v3833_v22, 0  ;;  %v1840_v39 = vor.u32 %v1838_v37, %v1837_v21 }
 0x1c5   : > { %v4119_v7 = vsel %vm1143_vm14, %v1745_v5, %v1752_v33  ;;  %v1862_v57 = vor.u32 %v1860_v54, %v1859_v59  ;;  %v1033_v5 = vshrl.u32 %v3984_v48, 16  ;;  %v1266_v17 = vsel %vm1215_vm13, %v1257_v32, 0 }
 0x1c6   : > { %1466 = vrot.lane.b32.xlu0 %v1449_v44, %s3203_s17  ;;  %v1423_v60 = vrot.slane %v4554_v6, 1  ;;  %v1254_v44 = vsel %vm1042_vm10, %v3903_v35, 0  ;;  %v4137_v29 = vsel %vm1143_vm14, %v1815_v41, %v1840_v39  ;;  %v1425_v41 = vshrl.u32 %v3959_v58, 16 }
 0x1c7   : > { %1387 = vrot.lane.b32.xlu1 %v1370_v45, %s3207_s29  ;;  %v1233_v45 = vsel %vm1042_vm10, %v3833_v22, 0  ;;  %v4140_v56 = vsel %vm1143_vm14, %v1837_v21, %v1862_v57  ;;  %v1247_v22 = vld [vmem:[#allocation2 + $0x50] sm:$0xff]  ;;  %v1035_v48 = vor.u32 %v1033_v5, %v4008_v20  ;;  %v1549_v27 = vrot.slane %v1266_v17, 1 }
 0x1c8   : > { %v4146_v31 = vsel %vm972_vm1, %v4035_v38, %v1423_v60  ;;  %v1500_v36 = vshll.u32 %v1247_v22, 16  ;;  %v1265_v23 = vsel %vm1214_vm15, %v1247_v22, 0  ;;  %v4162_v34 = vor.u32 %v1425_v41, %v1423_v60 }
 0x1c9   : > { %vm1044_vm11 = vcmp.ne.s16.totalorder %v1035_v48, 0  ;;  %v1547_v33 = vrot.slane %v1265_v23, 1  ;;  %v1255_v51 = vsel %vm1043_vm7, %v3959_v58, 0  ;;  %v1234_v37 = vsel %vm1043_vm7, %v3903_v35, 0 }
 0x1ca   : > { %1493 = vrot.lane.b32.xlu0 %v1254_v44, %s3207_s29  ;;  %v4166_v20 = vsel %vm1044_vm11, %v3903_v35, 0  ;;  %v1502_v18 = vrot.slane %v1500_v36, 1  ;;  %v1504_v32 = vshrl.u32 %v1247_v22, 16  ;;  %v1256_v17 = vsel %vm1044_vm11, %v1247_v22, 0  ;;  %v3039_v22 = vld [vmem:[#allocation2 + $0x10] sm:$0xff] }
 0x1cb   : > { %1414 = vrot.lane.b32.xlu1 %v1233_v45, %s3204_s13  ;;  %v1550_v54 = vsel %vm1357_vm8, %v1547_v33, %v1549_v27  ;;  %v1235_v41 = vsel %vm1044_vm11, %v3959_v58, 0  ;;  %v1047_v58 = vsel %vm1038_vm5, %v3039_v22, 0  ;;  %v3041_v22 = vld [vmem:[#allocation2 + $0x18] sm:$0xff] }
 0x1cc   : > { %v1901_v6 = vshrl.u32 %v1550_v54, 16  ;;  %v1503_v45 = vsel %vm972_vm1, %v4162_v34, %v1502_v18  ;;  %v1904_v52 = vshll.u32 %v1550_v54, 16  ;;  %vm1578_vm1 = vcmask 523264  }
 0x1ce   : > { %1519 = vrot.lane.b32.xlu0 %v4146_v31, %s3204_s13  ;;  %v1903_v39 = vrot.slane %v1901_v6, 7 }
 0x1cf   : > { %1344 = vrot.lane.b32.xlu1 %v3995_v43, %s3203_s17 }
 0x1d0   : > { %v1906_v57 = vor.u32 %v1904_v52, %v1903_v39 }
 0x1d2   : > { %1468 = vrot.lane.b32.xlu0 %v4064_v25, %s3203_s17  ;;  %v4555_v25 = vrot.slane %v3971_v63, 1 }
 0x1d3   : > { %1389 = vrot.lane.b32.xlu1 %v4067_v62, %s3207_s29 }
 0x1d4   : > { %v1548_v21 = vsel %vm1357_vm8, %v4555_v25, %v1547_v33  ;;  %vm1597_vm8 = vcmask 785408  }
 0x1d5   : > { %v1879_v62 = vshrl.u32 %v1548_v21, 16  ;;  %v1882_v44 = vshll.u32 %v1548_v21, 16 }
 0x1d6   : > { %1495 = vrot.lane.b32.xlu0 %v1255_v51, %s3207_s29 }
 0x1d7   : > { %1416 = vrot.lane.b32.xlu1 %v1234_v37, %s3204_s13  ;;  %v1881_v60 = vrot.slane %v1879_v62, 7  ;;  %v3040_v62 = vld [vmem:[#allocation2 + $0x8] sm:$0xff] }
 0x1d8   : > { %v1046_v54 = vsel %vm1037_vm3, %v3040_v62, 0 }
 0x1d9   : > { %v1884_v35 = vor.u32 %v1882_v44, %v1881_v60  ;;  %v4189_v5 = vsel %vm1143_vm14, %v1881_v60, %v1906_v57 }
 0x1da   : > { %1521 = vrot.lane.b32.xlu0 %v1503_v45, %s3204_s13 }
 0x1db   : > { %1346 = vrot.lane.b32.xlu1 %v4035_v38, %s3203_s17  ;;  %v4186_v63 = vsel %vm1143_vm14, %v1859_v59, %v1884_v35  ;;  %v1506_v38 = vor.u32 %v1504_v32, %v1502_v18 }
 0x1de   : > { %1470 = vrot.lane.b32.xlu0 %v4070_v53, %s3203_s17  ;;  %s2676_s17 = sshll.u32 %s3184_s8, 5  ;;  %s2499_s8 = sshll.u32 %s3504_s16, 4  ;;  %s4432_s8 = int_to_ptr.vmem [resolvable:$true] %s2499_s8 }
 0x1df   : > { %1391 = vrot.lane.b32.xlu1 %v4073_v50, %s3207_s29  ;;  %s3074_s20 = scalar_lea.vmem %s4432_s8, 2048  ;;  %p3081_p3 = scmp.lt.s32.totalorder %s4432_s8, %s3079_s15 }
 0x1e0   : > { %p3075_p2 = scmp.ne.s32.totalorder %s4432_s8, %s3074_s20  ;;  %p3082_p8 = scmp.lt.s32.totalorder %s3080_s12, %s3074_s20 }
 0x1e2   : > { %1497 = vrot.lane.b32.xlu0 %v1256_v17, %s3207_s29  ;;  %p3076_p0 = pnand %p3075_p2, %p4556_p4  ;;  %p3083_p10 = por %p3082_p8, %p3081_p3 }
 0x1e3   : > { %1418 = vrot.lane.b32.xlu1 %v1235_v41, %s3204_s13 }
 0x1e4   : > { %p3077_p1 = pneg %p3076_p0 }
 0x1e6   : > { %1523 = vrot.lane.b32.xlu0 %v1506_v38, %s3204_s13  ;;  %s2496_s13 = sadd.s32 %s2682_s27, %s2676_s17  ;;  %p3084_p11 = pnand %p3083_p10, %p3077_p1 }
 0x1e7   : > { %s2677_s30 = sshll.u32 %s2496_s13, 7 }
 0x1e8   : > { %v1335_v59 = vpop.permute.xlu0 %1334  ;;  %v1512_v36 = vpop.permute.xlu1 %1511  ;;  %s4430_s18 = scalar_lea.hbm %s4507_s7, %s2677_s30 }
 0x1e9   : > { %v1559_v18 = vsel %vm613_vm0, %v1047_v58, %v1335_v59 }
 0x1ec   : > { %v1333_v27 = vpop.permute.xlu0 %1332  ;;  %v1337_v53 = vpop.permute.xlu1 %1336 }
 0x1ed   : > { %v1556_v35 = vsel %vm613_vm0, %v1046_v54, %v1333_v27 }
 0x1f0   : > { %v1510_v23 = vpop.permute.xlu0 %1509 }
 0x1f5   : > { %v1405_v33 = vpop.permute.xlu1 %1404  ;;  %v1484_v51 = vpop.permute.xlu0 %1483 }
 0x1f9   : > { %v1486_v50 = vpop.permute.xlu1 %1485 }
 0x1fd   : > { %v1407_v37 = vpop.permute.xlu1 %1406 }
 0x200   : > { %v1459_v48 = vpop.permute.xlu0 %1458 }
 0x201   : > { %v1624_v25 = vsel %vm613_vm0, %v3560_v3, %v1459_v48  ;;  %v1380_v21 = vpop.permute.xlu1 %1379 }
 0x202   : > { %v1648_v6 = vsel %vm1578_vm1, %v1624_v25, %v1486_v50  ;;  %v1584_v60 = vsel %vm1578_vm1, %v1559_v18, %v1380_v21 }
 0x203   : > { %v1666_v26 = vsel %vm1597_vm8, %v1648_v6, %v1512_v36  ;;  %v1603_v44 = vsel %vm1597_vm8, %v1584_v60, %v1407_v37 }
 0x204   : > { %v1761_v45 = vshrl.u32 %v1666_v26, 16  ;;  %v1457_v39 = vpop.permute.xlu0 %1456  ;;  %v1754_v52 = vshrl.u32 %v1603_v44, 16  ;;  %v1764_v36 = vshll.u32 %v1666_v26, 16  ;;  %v1757_v50 = vshll.u32 %v1603_v44, 16 }
 0x205   : > { %v1621_v3 = vsel %vm613_vm0, %v3552_v0, %v1457_v39  ;;  %v1378_v57 = vpop.permute.xlu1 %1377 }
 0x206   : > { %v1646_v4 = vsel %vm1578_vm1, %v1621_v3, %v1484_v51  ;;  %v1756_v32 = vrot.slane %v1754_v52, 7  ;;  %v1582_v17 = vsel %vm1578_vm1, %v1556_v35, %v1378_v57  ;;  %v1763_v41 = vrot.slane %v1761_v45, 7 }
 0x207   : > { %v4218_v38 = vsel %vm1597_vm8, %v1646_v4, %v1510_v23  ;;  %v4221_v59 = vsel %vm1597_vm8, %v1582_v17, %v1405_v33  ;;  %v1048_v51 = vsel %vm1039_vm4, %v3041_v22, 0 }
 0x208   : > { %v1461_v37 = vpop.permute.xlu0 %1460  ;;  %v1725_v27 = vshrl.u32 %v4221_v59, 16  ;;  %v1735_v0 = vshrl.u32 %v4218_v38, 16  ;;  %v1766_v23 = vor.u32 %v1764_v36, %v1763_v41  ;;  %v1759_v25 = vor.u32 %v1757_v50, %v1756_v32 }
 0x209   : > { %v1382_v58 = vpop.permute.xlu1 %1381  ;;  %v1562_v33 = vsel %vm613_vm0, %v1048_v51, %v1337_v53  ;;  %v1627_v8 = vsel %vm613_vm0, %v3556_v1, %v1461_v37 }
 0x20a   : > { %v4227_v48 = vrot.slane %v1725_v27, 7  ;;  %v4229_v18 = vrot.slane %v1735_v0, 7  ;;  %v1586_v6 = vsel %vm1578_vm1, %v1562_v33, %v1382_v58  ;;  %v3042_v27 = vld [vmem:[#allocation2 + $0x20] sm:$0xff] }
 0x20b   : > { %v1049_v0 = vsel %vm1040_vm9, %v3042_v27, 0 }
 0x20c   : > { %v1488_v21 = vpop.permute.xlu0 %1487  ;;  %v1767_v62 = vsel %vm1143_vm14, %v4229_v18, %v1766_v23  ;;  %v1760_v54 = vsel %vm1143_vm14, %v4227_v48, %v1759_v25 }
 0x20d   : > { %2096 = vmatprep.mubr.bf16.mxu1 %v1767_v62  ;;  %v1409_v60 = vpop.permute.xlu1 %1408  ;;  %v1650_v53 = vsel %vm1578_vm1, %v1627_v8, %v1488_v21 }
 0x20e   : > { %2097 = vmatmul.mubr.bf16.vlgmr.msra.gmra.mrb[0].mxu1 %v1760_v54  ;;  %v1605_v26 = vsel %vm1597_vm8, %v1586_v6, %v1409_v60 }
 0x20f   : > { %v1776_v44 = vshrl.u32 %v1605_v26, 16  ;;  %v1779_v35 = vshll.u32 %v1605_v26, 16  ;;  %v875_v26 = vld [vmem:[#allocation2] sm:$0x80] }
 0x210   : > { %v1514_v45 = vpop.permute.xlu0 %1513 }
 0x211   : > { %v1668_v39 = vsel %vm1597_vm8, %v1650_v53, %v1514_v45  ;;  %v1778_v52 = vrot.slane %v1776_v44, 7  ;;  %v1339_v3 = vpop.permute.xlu1 %1338 }
 0x212   : > { %v1783_v57 = vshrl.u32 %v1668_v39, 16  ;;  %v1786_v1 = vshll.u32 %v1668_v39, 16  ;;  %v1565_v58 = vsel %vm613_vm0, %v1049_v0, %v1339_v3 }
 0x213   : > { %v1781_v4 = vor.u32 %v1779_v35, %v1778_v52  ;;  %v1045_v35 = vsel %vm1036_vm12, %v875_v26, 0 }
 0x214   : > { %v1785_v17 = vrot.slane %v1783_v57, 7  ;;  %v1463_v37 = vpop.permute.xlu0 %1462 }
 0x215   : > { %v1782_v36 = vsel %vm1143_vm14, %v1756_v32, %v1781_v4  ;;  %v1384_v22 = vpop.permute.xlu1 %1383  ;;  %v1630_v32 = vsel %vm613_vm0, %v3825_v47, %v1463_v37 }
 0x216   : > { %v1788_v50 = vor.u32 %v1786_v1, %v1785_v17  ;;  %v1588_v25 = vsel %vm1578_vm1, %v1565_v58, %v1384_v22  ;;  %v1728_v22 = vshll.u32 %v4221_v59, 16 }
 0x218   : > { %v1789_v51 = vsel %vm1143_vm14, %v1763_v41, %v1788_v50  ;;  %v1490_v23 = vpop.permute.xlu0 %1489 }
 0x219   : > { %2104 = vmatprep.mubr.bf16.mxu1 %v1789_v51  ;;  %v1411_v33 = vpop.permute.xlu1 %1410  ;;  %v1652_v24 = vsel %vm1578_vm1, %v1630_v32, %v1490_v23  ;;  %v1738_v32 = vshll.u32 %v4218_v38, 16 }
 0x21a   : > { %2105 = vmatmul.mubr.bf16.gmra.mrb[4].mxu1 %v1782_v36  ;;  %v1607_v21 = vsel %vm1597_vm8, %v1588_v25, %v1411_v33 }
 0x21b   : > { %v1798_v62 = vshrl.u32 %v1607_v21, 16  ;;  %v1801_v41 = vshll.u32 %v1607_v21, 16  ;;  %v1740_v59 = vor.u32 %v1738_v32, %v4229_v18 }
 0x21c   : > { %v1516_v54 = vpop.permute.xlu0 %1515 }
 0x21d   : > { %v4252_v8 = vrot.slane %v1798_v62, 7  ;;  %v1331_v6 = vpop.permute.xlu1 %1330  ;;  %v1670_v60 = vsel %vm1597_vm8, %v1652_v24, %v1516_v54  ;;  %v3043_v54 = vld [vmem:[#allocation2 + $0x28] sm:$0xff] }
 0x21e   : > { %v1805_v44 = vshrl.u32 %v1670_v60, 16  ;;  %v1808_v39 = vshll.u32 %v1670_v60, 16  ;;  %v1553_v1 = vsel %vm613_vm0, %v1045_v35, %v1331_v6 }
 0x21f   : > { %v1803_v53 = vor.u32 %v1801_v41, %v4252_v8  ;;  %v1050_v41 = vsel %vm1041_vm6, %v3043_v54, 0 }
 0x220   : > { %v4256_v45 = vrot.slane %v1805_v44, 7  ;;  %v1455_v47 = vpop.permute.xlu0 %1454 }
 0x221   : > { %v1376_v3 = vpop.permute.xlu1 %1375  ;;  %v1804_v57 = vsel %vm1143_vm14, %v1778_v52, %v1803_v53  ;;  %v1618_v0 = vsel %vm613_vm0, %v3529_v49, %v1455_v47 }
 0x222   : > { %v1810_v4 = vor.u32 %v1808_v39, %v4256_v45  ;;  %v1580_v37 = vsel %vm1578_vm1, %v1553_v1, %v1376_v3 }
 0x224   : > { %v1482_v36 = vpop.permute.xlu0 %1481  ;;  %v1811_v50 = vsel %vm1143_vm14, %v1785_v17, %v1810_v4  ;;  %v1730_v17 = vor.u32 %v1728_v22, %v4227_v48  ;;  %v3036_v48 = vld [vmem:[%s4502_s2 + $0x88] sm:$0xff]  }
 0x225   : > { %v1403_v27 = vpop.permute.xlu1 %1402  ;;  %2112 = vmatprep.mubr.bf16.mxu1 %v1811_v50  ;;  %v1644_v51 = vsel %vm1578_vm1, %v1618_v0, %v1482_v36 }
 0x226   : > { %v1599_v40 = vsel %vm1597_vm8, %v1580_v37, %v1403_v27  ;;  %2113 = vmatmul.mubr.bf16.gmra.mrb[8].mxu1 %v1804_v57 }
 0x227   : > { %v1722_v52 = vshrl.u32 %v1599_v40, 16 }
 0x228   : > { %v1508_v58 = vpop.permute.xlu0 %1507 }
 0x229   : > { %v1724_v23 = vrot.slane %v1722_v52, 7  ;;  %v1341_v25 = vpop.permute.xlu1 %1340  ;;  %v1662_v33 = vsel %vm1597_vm8, %v1644_v51, %v1508_v58 }
 0x22a   : > { %v1732_v21 = vshrl.u32 %v1662_v33, 16  ;;  %v1568_v38 = vsel %vm613_vm0, %v1050_v41, %v1341_v25 }
 0x22b   : > { %v1731_v49 = vsel %vm1143_vm14, %v1724_v23, %v1730_v17 }
 0x22c   : > { %v1734_v62 = vrot.slane %v1732_v21, 7  ;;  %v1465_v24 = vpop.permute.xlu0 %1464 }
 0x22d   : > { %v1386_v6 = vpop.permute.xlu1 %1385  ;;  %v1633_v18 = vsel %vm613_vm0, %v3909_v46, %v1465_v24 }
 0x22e   : > { %v1741_v60 = vsel %vm1143_vm14, %v1734_v62, %v1740_v59  ;;  %v1590_v44 = vsel %vm1578_vm1, %v1568_v38, %v1386_v6 }
 0x22f   : > { %2088 = vmatprep.mubr.bf16.mxu0 %v1741_v60 }
 0x230   : > { %v1492_v26 = vpop.permute.xlu0 %1491  ;;  %2089 = vmatmul.mubr.bf16.vlgmr.msra.gmra.mrb[20].mxu0 %v1731_v49 }
 0x231   : > { %v1413_v53 = vpop.permute.xlu1 %1412  ;;  %2822 = vmatpush3.bf16.msra.mxu0 %v3980_v30  ;;  %2825 = vmatprep.mubr.msk.bf16.mxu0 %vm613_vm0, %v4119_v7  ;;  %v1654_v47 = vsel %vm1578_vm1, %v1633_v18, %v1492_v26 }
 0x232   : > { %v1609_v2 = vsel %vm1597_vm8, %v1590_v44, %v1413_v53  ;;  %2823 = vmatprep.subr.bf16.mxu0 %v3036_v48 }
 0x233   : > { %v1820_v39 = vshrl.u32 %v1609_v2, 16  ;;  %v1823_v57 = vshll.u32 %v1609_v2, 16 }
 0x234   : > { %v1518_v35 = vpop.permute.xlu0 %1517 }
 0x235   : > { %v1822_v3 = vrot.slane %v1820_v39, 7  ;;  %v1343_v4 = vpop.permute.xlu1 %1342  ;;  %v1672_v1 = vsel %vm1597_vm8, %v1654_v47, %v1518_v35  ;;  %2824 = vmatpush3.bf16.msra.mxu0 %v3036_v48 }
 0x236   : > { %v1827_v36 = vshrl.u32 %v1672_v1, 16  ;;  %v1830_v30 = vshll.u32 %v1672_v1, 16  ;;  %v1571_v40 = vsel %vm613_vm0, %v4078_v19, %v1343_v4 }
 0x237   : > { %v1825_v46 = vor.u32 %v1823_v57, %v1822_v3 }
 0x238   : > { %v1829_v50 = vrot.slane %v1827_v36, 7  ;;  %v1467_v37 = vpop.permute.xlu0 %1466  ;;  %2826 = vmatmul.mubr.msk.bf16.vlgmr.msra.gmra.mrb[24].mxu0 %vm613_vm0, %v4109_v55 }
 0x239   : > { %v1388_v7 = vpop.permute.xlu1 %1387  ;;  %v1826_v27 = vsel %vm1143_vm14, %v4252_v8, %v1825_v46  ;;  %2829 = vmatprep.mubr.msk.bf16.mxu0 %vm613_vm0, %v4112_v28  ;;  %v1636_v55 = vsel %vm613_vm0, %v3995_v43, %v1467_v37 }
 0x23a   : > { %v1832_v0 = vor.u32 %v1830_v30, %v1829_v50  ;;  %v1592_v51 = vsel %vm1578_vm1, %v1571_v40, %v1388_v7 }
 0x23c   : > { %v1494_v22 = vpop.permute.xlu0 %1493  ;;  %v1833_v52 = vsel %vm1143_vm14, %v4256_v45, %v1832_v0 }
 0x23d   : > { %v1415_v58 = vpop.permute.xlu1 %1414  ;;  %2120 = vmatprep.mubr.bf16.mxu1 %v1833_v52  ;;  %v1656_v28 = vsel %vm1578_vm1, %v1636_v55, %v1494_v22 }
 0x23e   : > { %v1611_v8 = vsel %vm1597_vm8, %v1592_v51, %v1415_v58  ;;  %2121 = vmatmul.mubr.bf16.gmra.mrb[12].mxu1 %v1826_v27 }
 0x23f   : > { %v1842_v23 = vshrl.u32 %v1611_v8, 16  ;;  %v1845_v17 = vshll.u32 %v1611_v8, 16 }
 0x240   : > { %v1520_v25 = vpop.permute.xlu0 %1519  ;;  %2830 = vmatmul.mubr.msk.bf16.gmra.mrb[28].mxu0 %vm613_vm0, %v4122_v42 }
 0x241   : > { %v1844_v19 = vrot.slane %v1842_v23, 7  ;;  %v1345_v45 = vpop.permute.xlu1 %1344  ;;  %v1674_v33 = vsel %vm1597_vm8, %v1656_v28, %v1520_v25  ;;  %2833 = vmatprep.mubr.msk.bf16.mxu0 %vm613_vm0, %v4137_v29  ;;  %v3037_v28 = vld [vmem:[%s4503_s3] sm:$0xff]   ;;  %v3038_v25 = vld [vmem:[%s4503_s3 + $0x8] sm:$0xff]  }
 0x242   : > { %v1849_v43 = vshrl.u32 %v1674_v33, 16  ;;  %v1852_v49 = vshll.u32 %v1674_v33, 16  ;;  %v1574_v42 = vsel %vm613_vm0, %v4127_v61, %v1345_v45  ;;  %2841 = vmatprep.subr.bf16.mxu1 %v3037_v28 }
 0x243   : > { %v1847_v32 = vor.u32 %v1845_v17, %v1844_v19  ;;  %2842 = vmatpush3.bf16.msra.mxu1 %v3037_v28 }
 0x244   : > { %v1851_v21 = vrot.slane %v1849_v43, 7  ;;  %v1469_v62 = vpop.permute.xlu0 %1468  ;;  %2843 = vmatprep.subr.bf16.mxu1 %v3038_v25 }
 0x245   : > { %v1390_v24 = vpop.permute.xlu1 %1389  ;;  %v1848_v59 = vsel %vm1143_vm14, %v1822_v3, %v1847_v32  ;;  %v1639_v48 = vsel %vm613_vm0, %v4146_v31, %v1469_v62 }
 0x246   : > { %v1854_v54 = vor.u32 %v1852_v49, %v1851_v21  ;;  %v1594_v29 = vsel %vm1578_vm1, %v1574_v42, %v1390_v24 }
 0x247   : > { %2844 = vmatpush3.bf16.msra.mxu1 %v3038_v25 }
 0x248   : > { %v1496_v41 = vpop.permute.xlu0 %1495  ;;  %v1855_v6 = vsel %vm1143_vm14, %v1829_v50, %v1854_v54  ;;  %2834 = vmatmul.mubr.msk.bf16.gmra.mrb[32].mxu0 %vm613_vm0, %v4140_v56 }
 0x249   : > { %v1417_v60 = vpop.permute.xlu1 %1416  ;;  %2128 = vmatprep.mubr.bf16.mxu1 %v1855_v6  ;;  %2837 = vmatprep.mubr.msk.bf16.mxu0 %vm613_vm0, %v4186_v63  ;;  %v1658_v26 = vsel %vm1578_vm1, %v1639_v48, %v1496_v41 }
 0x24a   : > { %v1613_v38 = vsel %vm1597_vm8, %v1594_v29, %v1417_v60  ;;  %2129 = vmatmul.mubr.bf16.gmra.mrb[16].mxu1 %v1848_v59 }
 0x24b   : > { %v1864_v61 = vshrl.u32 %v1613_v38, 16  ;;  %v1867_v18 = vshll.u32 %v1613_v38, 16 }
 0x24c   : > { %v1522_v44 = vpop.permute.xlu0 %1521 }
 0x24d   : > { %v1866_v53 = vrot.slane %v1864_v61, 7  ;;  %v1347_v56 = vpop.permute.xlu1 %1346  ;;  %v1676_v2 = vsel %vm1597_vm8, %v1658_v26, %v1522_v44 }
 0x24e   : > { %v1871_v39 = vshrl.u32 %v1676_v2, 16  ;;  %v1874_v31 = vshll.u32 %v1676_v2, 16  ;;  %v1577_v1 = vsel %vm613_vm0, %v4166_v20, %v1347_v56  ;;  %v4348_v56 = vld [vmem:[%s4505_s5] ss:$0 sm:$0xff] }
 0x24f   : > { %v1869_v47 = vor.u32 %v1867_v18, %v1866_v53 }
 0x250   : > { %v1873_v35 = vrot.slane %v1871_v39, 7  ;;  %v1471_v3 = vpop.permute.xlu0 %1470  ;;  %2838 = vmatmul.mubr.msk.bf16.gmra.mrb[36].mxu0 %vm613_vm0, %v4189_v5 }
 0x251   : > { %v1392_v57 = vpop.permute.xlu1 %1391  ;;  %v1870_v4 = vsel %vm1143_vm14, %v1844_v19, %v1869_v47  ;;  %v1642_v37 = vsel %vm613_vm0, %v4162_v34, %v1471_v3 }
 0x252   : > { %v1876_v63 = vor.u32 %v1874_v31, %v1873_v35  ;;  %v1596_v50 = vsel %vm1578_vm1, %v1577_v1, %v1392_v57 }
 0x254   : > { %v1498_v36 = vpop.permute.xlu0 %1497  ;;  %v1877_v46 = vsel %vm1143_vm14, %v1851_v21, %v1876_v63 }
 0x255   : > { %v1419_v30 = vpop.permute.xlu1 %1418  ;;  %2136 = vmatprep.mubr.bf16.mxu1 %v1877_v46  ;;  %v1660_v5 = vsel %vm1578_vm1, %v1642_v37, %v1498_v36 }
 0x256   : > { %v1615_v7 = vsel %vm1597_vm8, %v1596_v50, %v1419_v30  ;;  %2137 = vmatmul.mubr.bf16.gmra.mrb[20].mxu1 %v1870_v4 }
 0x257   : > { %v1886_v27 = vshrl.u32 %v1615_v7, 16  ;;  %v1889_v22 = vshll.u32 %v1615_v7, 16 }
 0x258   : > { %v1524_v0 = vpop.permute.xlu0 %1523 }
 0x259   : > { %v1888_v40 = vrot.slane %v1886_v27, 7  ;;  %v1678_v20 = vsel %vm1597_vm8, %v1660_v5, %v1524_v0 }
 0x25a   : > { %v1893_v52 = vshrl.u32 %v1678_v20, 16  ;;  %v1896_v55 = vshll.u32 %v1678_v20, 16 }
 0x25b   : > { %v1891_v51 = vor.u32 %v1889_v22, %v1888_v40 }
 0x25c   : > { %v1895_v58 = vrot.slane %v1893_v52, 7 }
 0x25d   : > { %v1892_v8 = vsel %vm1143_vm14, %v1866_v53, %v1891_v51 }
 0x25e   : > { %v1898_v23 = vor.u32 %v1896_v55, %v1895_v58 }
 0x260   : > { %v1899_v34 = vsel %vm1143_vm14, %v1873_v35, %v1898_v23 }
 0x261   : > { %2144 = vmatprep.mubr.bf16.mxu1 %v1899_v34 }
 0x262   : > { %2145 = vmatmul.mubr.bf16.gmra.mrb[24].mxu1 %v1892_v8 }
 0x2e1   : > { %v2723_v19 = vpop.f32.mrb[0].mxu1 }
 0x2e2   : > { %v2724_v17 = vpop.f32.mrb[1].mxu1 }
 0x2e3   : > { %v2725_v45 = vadd.f32 %v2724_v17, %v2723_v19  ;;  %v2726_v33 = vpop.f32.mrb[2].mxu1 }
 0x2e4   : > { %v2727_v43 = vpop.f32.mrb[3].mxu1 }
 0x2e5   : > { %v2728_v32 = vadd.f32 %v2727_v43, %v2726_v33  ;;  %v2099_v2 = vadd.f32 %v2725_v45, %v4348_v56 }
 0x2e7   : > { %v2102_v3 = vadd.f32 %v2728_v32, %v4348_v56 }
 0x2ed   : > { %v2729_v21 = vpop.f32.mrb[4].mxu1 }
 0x2ee   : > { %v2730_v49 = vpop.f32.mrb[5].mxu1 }
 0x2ef   : > { %v2731_v62 = vadd.f32 %v2730_v49, %v2729_v21  ;;  %v2732_v24 = vpop.f32.mrb[6].mxu1 }
 0x2f0   : > { %v2733_v59 = vpop.f32.mrb[7].mxu1 }
 0x2f1   : > { %v2734_v54 = vadd.f32 %v2733_v59, %v2732_v24  ;;  %v2107_v58 = vadd.f32 %v2731_v62, %v4348_v56 }
 0x2f3   : > { %v2110_v17 = vadd.f32 %v2734_v54, %v4348_v56 }
 0x2f9   : > { %v2735_v42 = vpop.f32.mrb[8].mxu1 }
 0x2fa   : > { %v2736_v41 = vpop.f32.mrb[9].mxu1 }
 0x2fb   : > { %v2737_v6 = vadd.f32 %v2736_v41, %v2735_v42  ;;  %v2738_v29 = vpop.f32.mrb[10].mxu1 }
 0x2fc   : > { %v2739_v60 = vpop.f32.mrb[11].mxu1 }
 0x2fd   : > { %v2740_v48 = vadd.f32 %v2739_v60, %v2738_v29  ;;  %v2115_v40 = vadd.f32 %v2737_v6, %v4348_v56 }
 0x2ff   : > { %v2118_v34 = vadd.f32 %v2740_v48, %v4348_v56 }
 0x303   : > { %v2717_v38 = vpop.f32.mrb[20].mxu0 }
 0x304   : > { %v2718_v61 = vpop.f32.mrb[21].mxu0 }
 0x305   : > { %v2719_v26 = vadd.f32 %v2718_v61, %v2717_v38  ;;  %v2720_v44 = vpop.f32.mrb[22].mxu0 }
 0x306   : > { %v2721_v53 = vpop.f32.mrb[23].mxu0 }
 0x307   : > { %v2722_v18 = vadd.f32 %v2721_v53, %v2720_v44  ;;  %v2091_v47 = vadd.f32 %v2719_v26, %v4348_v56 }
 0x309   : > { %v2094_v63 = vadd.f32 %v2722_v18, %v4348_v56 }
 0x30b   : > { %v2827_v39 = vpop.f32.mrb[24].mxu0 }
 0x30c   : > { %v2196_v35 = vadd.f32 %v2827_v39, %v2099_v2  ;;  %v2187_v31 = vpop.f32.mrb[25].mxu0 }
 0x30d   : > { %v2188_v57 = vadd.f32 %v2187_v31, %v2091_v47  ;;  %v2828_v4 = vpop.f32.mrb[26].mxu0 }
 0x30e   : > { %v2199_v1 = vadd.f32 %v2828_v4, %v2102_v3  ;;  %v2190_v36 = vpop.f32.mrb[27].mxu0  ;;  %v2252_v50 = vmax.f32 %v2196_v35, 0.0 }
 0x30f   : > { %v2191_v46 = vadd.f32 %v2190_v36, %v2094_v63  ;;  %v2250_v37 = vmax.f32 %v2188_v57, 0.0 }
 0x310   : > { %v2253_v30 = vmax.f32 %v2199_v1, 0.0 }
 0x311   : > { %v2251_v7 = vmax.f32 %v2191_v46, 0.0  ;;  %v2741_v27 = vpop.f32.mrb[12].mxu1 }
 0x312   : > { %v2267_v5 = vpack.c.bf16 %v2253_v30, %v2252_v50  ;;  %v2742_v0 = vpop.f32.mrb[13].mxu1 }
 0x313   : > { %v2266_v22 = vpack.c.bf16 %v2251_v7, %v2250_v37  ;;  %v2743_v20 = vadd.f32 %v2742_v0, %v2741_v27  ;;  %v2744_v52 = vpop.f32.mrb[14].mxu1  ;;  %v2831_v51 = vpop.f32.mrb[28].mxu0 }
 0x314   : > { %v2212_v55 = vadd.f32 %v2831_v51, %v2115_v40  ;;  %v2745_v8 = vpop.f32.mrb[15].mxu1  ;;  %v2203_v23 = vpop.f32.mrb[29].mxu0 }
 0x315   : > { %v2746_v28 = vadd.f32 %v2745_v8, %v2744_v52  ;;  %v2204_v25 = vadd.f32 %v2203_v23, %v2107_v58  ;;  %v2832_v19 = vpop.f32.mrb[30].mxu0  ;;  %2845 = vmatprep.mubr.msk.bf16.mxu1 %vm613_vm0, %v2266_v22  ;;  %v2123_v41 = vadd.f32 %v2743_v20, %v4348_v56 }
 0x316   : > { %v2215_v45 = vadd.f32 %v2832_v19, %v2118_v34  ;;  %v2206_v33 = vpop.f32.mrb[31].mxu0  ;;  %2846 = vmatmul.mubr.msk.bf16.vlgmr.msra.gmra.mrb[28].mxu1 %vm613_vm0, %v2267_v5  ;;  %v2256_v32 = vmax.f32 %v2212_v55, 0.0 }
 0x317   : > { %v2207_v43 = vadd.f32 %v2206_v33, %v2110_v17  ;;  %v2254_v49 = vmax.f32 %v2204_v25, 0.0  ;;  %v2126_v54 = vadd.f32 %v2746_v28, %v4348_v56 }
 0x318   : > { %v2257_v21 = vmax.f32 %v2215_v45, 0.0 }
 0x319   : > { %v2255_v62 = vmax.f32 %v2207_v43, 0.0 }
 0x31a   : > { %v2269_v24 = vpack.c.bf16 %v2257_v21, %v2256_v32 }
 0x31b   : > { %v2268_v59 = vpack.c.bf16 %v2255_v62, %v2254_v49  ;;  %v2835_v42 = vpop.f32.mrb[32].mxu0 }
 0x31c   : > { %v2219_v6 = vpop.f32.mrb[33].mxu0 }
 0x31d   : > { %v2220_v29 = vadd.f32 %v2219_v6, %v2123_v41  ;;  %v2747_v60 = vpop.f32.mrb[16].mxu1  ;;  %v2836_v48 = vpop.f32.mrb[34].mxu0  ;;  %2849 = vmatprep.mubr.msk.bf16.mxu1 %vm613_vm0, %v2268_v59  ;;  %v4377_v59 = vld [vmem:[%s4506_s6] ss:$0 sm:$0xff]  ;;  %v2278_v6 = vunpack.c.l.bf16 %v3436_v9 }
 0x31e   : > { %v2748_v38 = vpop.f32.mrb[17].mxu1  ;;  %v2222_v61 = vpop.f32.mrb[35].mxu0  ;;  %2850 = vmatmul.mubr.msk.bf16.gmra.mrb[32].mxu1 %vm613_vm0, %v2269_v24 }
 0x31f   : > { %v2749_v26 = vadd.f32 %v2748_v38, %v2747_v60  ;;  %v2223_v44 = vadd.f32 %v2222_v61, %v2126_v54  ;;  %v2750_v53 = vpop.f32.mrb[18].mxu1  ;;  %v2258_v2 = vmax.f32 %v2220_v29, 0.0  ;;  %v2281_v60 = vunpack.c.h.bf16 %v3439_v10 }
 0x320   : > { %v2751_v18 = vpop.f32.mrb[19].mxu1  ;;  %v2279_v38 = vunpack.c.h.bf16 %v3436_v9 }
 0x321   : > { %v2131_v39 = vadd.f32 %v2749_v26, %v4348_v56  ;;  %v2259_v47 = vmax.f32 %v2223_v44, 0.0  ;;  %v2752_v35 = vadd.f32 %v2751_v18, %v2750_v53 }
 0x323   : > { %v2228_v31 = vadd.f32 %v2835_v42, %v2131_v39  ;;  %v2270_v3 = vpack.c.bf16 %v2259_v47, %v2258_v2  ;;  %v2134_v57 = vadd.f32 %v2752_v35, %v4348_v56  ;;  %v2839_v4 = vpop.f32.mrb[36].mxu0  ;;  %v2280_v42 = vunpack.c.l.bf16 %v3439_v10 }
 0x324   : > { %v2235_v63 = vpop.f32.mrb[37].mxu0 }
 0x325   : > { %v2231_v1 = vadd.f32 %v2836_v48, %v2134_v57  ;;  %2853 = vmatprep.mubr.msk.bf16.mxu1 %vm613_vm0, %v2270_v3  ;;  %v2840_v36 = vpop.f32.mrb[38].mxu0  ;;  %v2260_v50 = vmax.f32 %v2228_v31, 0.0  ;;  %v2284_v31 = vunpack.c.l.bf16 %v3447_v12  ;;  %v2282_v57 = vunpack.c.l.bf16 %v3444_v11 }
 0x326   : > { %v2238_v46 = vpop.f32.mrb[39].mxu0 }
 0x327   : > { %v2261_v30 = vmax.f32 %v2231_v1, 0.0  ;;  %v2285_v1 = vunpack.c.h.bf16 %v3447_v12 }
 0x329   : > { %v2753_v37 = vpop.f32.mrb[20].mxu1  ;;  %v2271_v7 = vpack.c.bf16 %v2261_v30, %v2260_v50  ;;  %v2283_v50 = vunpack.c.h.bf16 %v3444_v11 }
 0x32a   : > { %v2754_v27 = vpop.f32.mrb[21].mxu1 }
 0x32b   : > { %v2755_v5 = vadd.f32 %v2754_v27, %v2753_v37  ;;  %v2756_v0 = vpop.f32.mrb[22].mxu1  ;;  %2854 = vmatmul.mubr.msk.bf16.gmra.mrb[36].mxu1 %vm613_vm0, %v2271_v7 }
 0x32c   : > { %v2757_v40 = vpop.f32.mrb[23].mxu1 }
 0x32d   : > { %v2758_v22 = vadd.f32 %v2757_v40, %v2756_v0  ;;  %v2139_v20 = vadd.f32 %v2755_v5, %v4348_v56 }
 0x32f   : > { %v2236_v52 = vadd.f32 %v2235_v63, %v2139_v20  ;;  %v2142_v51 = vadd.f32 %v2758_v22, %v4348_v56 }
 0x331   : > { %v2239_v58 = vadd.f32 %v2238_v46, %v2142_v51  ;;  %v2262_v55 = vmax.f32 %v2236_v52, 0.0  ;;  %v2288_v51 = vunpack.c.l.bf16 %v3455_v14 }
 0x333   : > { %v2263_v8 = vmax.f32 %v2239_v58, 0.0  ;;  %v2286_v58 = vunpack.c.l.bf16 %v3452_v13 }
 0x335   : > { %v2272_v23 = vpack.c.bf16 %v2263_v8, %v2262_v55  ;;  %v2759_v34 = vpop.f32.mrb[24].mxu1 }
 0x336   : > { %v2760_v28 = vpop.f32.mrb[25].mxu1 }
 0x337   : > { %v2761_v25 = vadd.f32 %v2760_v28, %v2759_v34  ;;  %v2762_v19 = vpop.f32.mrb[26].mxu1  ;;  %2857 = vmatprep.mubr.msk.bf16.mxu1 %vm613_vm0, %v2272_v23  ;;  %v2289_v23 = vunpack.c.h.bf16 %v3455_v14 }
 0x338   : > { %v2763_v17 = vpop.f32.mrb[27].mxu1 }
 0x339   : > { %v2147_v45 = vadd.f32 %v2761_v25, %v4348_v56  ;;  %v2764_v33 = vadd.f32 %v2763_v17, %v2762_v19  ;;  %v2287_v25 = vunpack.c.h.bf16 %v3452_v13  ;;  %v2292_v13 = vunpack.c.l.bf16 %v3463_v16 }
 0x33b   : > { %v2244_v43 = vadd.f32 %v2839_v4, %v2147_v45  ;;  %v2150_v32 = vadd.f32 %v2764_v33, %v4348_v56 }
 0x33d   : > { %v2247_v21 = vadd.f32 %v2840_v36, %v2150_v32  ;;  %v2264_v49 = vmax.f32 %v2244_v43, 0.0 }
 0x33f   : > { %v2265_v62 = vmax.f32 %v2247_v21, 0.0 }
 0x341   : > { %v2273_v24 = vpack.c.bf16 %v2265_v62, %v2264_v49 }
 0x343   : > { %2858 = vmatmul.mubr.msk.bf16.gmra.mrb[40].mxu1 %vm613_vm0, %v2273_v24 }
 0x3e9   : > { %v2847_v41 = vpop.f32.mrb[28].mxu1 }
 0x3ea   : > { %v2380_v29 = vadd.f32 %v2847_v41, %v4377_v59  ;;  %v2371_v56 = vpop.f32.mrb[29].mxu1  ;;  %v2290_v41 = vunpack.c.l.bf16 %v3460_v15 }
 0x3eb   : > { %v2372_v48 = vadd.f32 %v4377_v59, %v2371_v56  ;;  %v2848_v54 = vpop.f32.mrb[30].mxu1  ;;  %v2293_v56 = vunpack.c.h.bf16 %v3463_v16 }
 0x3ec   : > { %v2436_v61 = vadd.f32 %v2380_v29, %v2280_v42  ;;  %v2383_v26 = vadd.f32 %v2848_v54, %v4377_v59  ;;  %v2374_v44 = vpop.f32.mrb[31].mxu1  ;;  %v2291_v54 = vunpack.c.h.bf16 %v3460_v15 }
 0x3ed   : > { %v2434_v53 = vadd.f32 %v2372_v48, %v2278_v6  ;;  %v2375_v18 = vadd.f32 %v4377_v59, %v2374_v44 }
 0x3ee   : > { %v2452_v2 = vmax.f32 %v2436_v61, 0.0  ;;  %v2437_v39 = vadd.f32 %v2383_v26, %v2281_v60 }
 0x3ef   : > { %v2450_v47 = vmax.f32 %v2434_v53, 0.0  ;;  %v2435_v35 = vadd.f32 %v2375_v18, %v2279_v38 }
 0x3f0   : > { %2468 = vst [vmem:[%s3504_s16 + $0x10] sm:$0xff] %v2452_v2  ;;  %v2453_v10 = vmax.f32 %v2437_v39, 0.0 }
 0x3f1   : > { %2466 = vst [vmem:[%s3504_s16] sm:$0xff] %v2450_v47  ;;  %v2451_v3 = vmax.f32 %v2435_v35, 0.0  ;;  %v2851_v9 = vpop.f32.mrb[32].mxu1 }
 0x3f2   : > { %2469 = vst [vmem:[%s3504_s16 + $0x18] sm:$0xff] %v2453_v10  ;;  %v2396_v4 = vadd.f32 %v2851_v9, %v4377_v59  ;;  %v2387_v63 = vpop.f32.mrb[33].mxu1 }
 0x3f3   : > { %2467 = vst [vmem:[%s3504_s16 + $0x8] sm:$0xff] %v2451_v3  ;;  %v2388_v36 = vadd.f32 %v4377_v59, %v2387_v63  ;;  %v2852_v46 = vpop.f32.mrb[34].mxu1 }
 0x3f4   : > { %v2440_v30 = vadd.f32 %v2396_v4, %v2284_v31  ;;  %v2399_v37 = vadd.f32 %v2852_v46, %v4377_v59  ;;  %v2390_v7 = vpop.f32.mrb[35].mxu1 }
 0x3f5   : > { %v2438_v27 = vadd.f32 %v2388_v36, %v2282_v57  ;;  %v2391_v5 = vadd.f32 %v4377_v59, %v2390_v7 }
 0x3f6   : > { %v2456_v0 = vmax.f32 %v2440_v30, 0.0  ;;  %v2441_v40 = vadd.f32 %v2399_v37, %v2285_v1 }
 0x3f7   : > { %v2454_v22 = vmax.f32 %v2438_v27, 0.0  ;;  %v2439_v12 = vadd.f32 %v2391_v5, %v2283_v50 }
 0x3f8   : > { %2472 = vst [vmem:[%s3504_s16 + $0x30] sm:$0xff] %v2456_v0  ;;  %v2457_v20 = vmax.f32 %v2441_v40, 0.0 }
 0x3f9   : > { %2470 = vst [vmem:[%s3504_s16 + $0x20] sm:$0xff] %v2454_v22  ;;  %v2455_v52 = vmax.f32 %v2439_v12, 0.0 }
 0x3fa   : > { %2473 = vst [vmem:[%s3504_s16 + $0x38] sm:$0xff] %v2457_v20 }
 0x3fb   : > { %2471 = vst [vmem:[%s3504_s16 + $0x28] sm:$0xff] %v2455_v52 }
 0x3fe   : > { %v2855_v11 = vpop.f32.mrb[36].mxu1 }
 0x3ff   : > { %v2412_v55 = vadd.f32 %v2855_v11, %v4377_v59  ;;  %v2403_v8 = vpop.f32.mrb[37].mxu1 }
 0x400   : > { %v2404_v34 = vadd.f32 %v4377_v59, %v2403_v8  ;;  %v2856_v28 = vpop.f32.mrb[38].mxu1 }
 0x401   : > { %v2444_v19 = vadd.f32 %v2412_v55, %v2288_v51  ;;  %v2415_v17 = vadd.f32 %v2856_v28, %v4377_v59  ;;  %v2406_v45 = vpop.f32.mrb[39].mxu1 }
 0x402   : > { %v2442_v33 = vadd.f32 %v2404_v34, %v2286_v58  ;;  %v2407_v43 = vadd.f32 %v4377_v59, %v2406_v45 }
 0x403   : > { %v2460_v32 = vmax.f32 %v2444_v19, 0.0  ;;  %v2445_v21 = vadd.f32 %v2415_v17, %v2289_v23 }
 0x404   : > { %v2458_v49 = vmax.f32 %v2442_v33, 0.0  ;;  %v2443_v14 = vadd.f32 %v2407_v43, %v2287_v25 }
 0x405   : > { %2476 = vst [vmem:[%s3504_s16 + $0x50] sm:$0xff] %v2460_v32  ;;  %v2461_v62 = vmax.f32 %v2445_v21, 0.0 }
 0x406   : > { %2474 = vst [vmem:[%s3504_s16 + $0x40] sm:$0xff] %v2458_v49  ;;  %v2459_v24 = vmax.f32 %v2443_v14, 0.0 }
 0x407   : > { %2477 = vst [vmem:[%s3504_s16 + $0x58] sm:$0xff] %v2461_v62 }
 0x408   : > { %2475 = vst [vmem:[%s3504_s16 + $0x48] sm:$0xff] %v2459_v24 }
 0x416   : > { %v2859_v42 = vpop.f32.mrb[40].mxu1 }
 0x417   : > { %v2428_v6 = vadd.f32 %v2859_v42, %v4377_v59  ;;  %v2419_v29 = vpop.f32.mrb[41].mxu1 }
 0x418   : > { %v2420_v60 = vadd.f32 %v4377_v59, %v2419_v29  ;;  %v2860_v48 = vpop.f32.mrb[42].mxu1 }
 0x419   : > { %v2448_v38 = vadd.f32 %v2428_v6, %v2292_v13  ;;  %v2431_v61 = vadd.f32 %v2860_v48, %v4377_v59  ;;  %v2422_v26 = vpop.f32.mrb[43].mxu1 }
 0x41a   : > { %v2446_v44 = vadd.f32 %v2420_v60, %v2290_v41  ;;  %v2423_v53 = vadd.f32 %v4377_v59, %v2422_v26 }
 0x41b   : > { %v2464_v16 = vmax.f32 %v2448_v38, 0.0  ;;  %v2449_v18 = vadd.f32 %v2431_v61, %v2293_v56 }
 0x41c   : > { %v2462_v2 = vmax.f32 %v2446_v44, 0.0  ;;  %v2447_v39 = vadd.f32 %v2423_v53, %v2291_v54 }
 0x41d   : > { %2480 = vst [vmem:[%s3504_s16 + $0x70] sm:$0xff] %v2464_v16  ;;  %v2465_v15 = vmax.f32 %v2449_v18, 0.0 }
 0x41e   : > { %2478 = vst [vmem:[%s3504_s16 + $0x60] sm:$0xff] %v2462_v2  ;;  %v2463_v59 = vmax.f32 %v2447_v39, 0.0 }
 0x41f   : > { %2481 = vst [vmem:[%s3504_s16 + $0x78] sm:$0xff] %v2465_v15 }
 0x420   : > { %2479 = vst [vmem:[%s3504_s16 + $0x68] sm:$0xff] %v2463_v59 }
 0x421   : > { %3087 = shalt.err (!%p3084_p11)
}
 0x422   : > { %s3088_s21 = scalar_lea.hbm %s4430_s18, 2048  ;;  %s3092_s17 = scalar_lea.hbm %s4507_s7, 8192 }
 0x423   : > { %p3089_p13 = scmp.ne.s32.totalorder %s4430_s18, %s3088_s21  ;;  %p3093_p9 = scmp.lt.u32.totalorder %s4430_s18, %s4507_s7 }
 0x424   : > { %p3094_p7 = scmp.lt.u32.totalorder %s3092_s17, %s3088_s21  ;;  %p3096_p2 = scmp.lt.u32.totalorder %s3088_s21, %s4430_s18 }
 0x425   : > { %p3090_p5 = pnand %p3089_p13, %p4556_p4 }
 0x426   : > { %p3095_p12 = por %p3094_p7, %p3093_p9 }
 0x427   : > { %p3091_p6 = pneg %p3090_p5 }
 0x428   : > { %p3097_p0 = por %p3096_p2, %p3095_p12 }
 0x42a   : > { %p3098_p1 = pnand %p3097_p0, %p3091_p6 }
 0x42c   : > { %3101 = shalt.err (!%p3098_p1)
}
 0x42d   : > { %s3209_s29 = smov 128   ;;  %s3210_s19 = smov 8  }
 0x42e   : > { %2882 = dma.vmem_to_hbm [thread:$0]  (%p4556_p4), %s4432_s8, 2048, %s4430_s18, %s4439_s10, %s3209_s29, %s3209_s29, %s3210_s19  }
 0x42f PF: > { %p2893_p3 = scmp.ge.s32.totalorder %s3196_s11, 2  ;;  %s2514_s20 = sand.u32 1, %s3156_s24  }
 0x430   : > { %p4557_p8 = scmp.ne.s32.totalorder %s4527_s9, 0  ;;  %s2515_s22 = scalar_lea.sflag [#allocation5], %s2514_s20 }
 0x432   : > { %p2889_p10 = pnand %p2893_p3, %p4557_p8 }
 0x434   : > { %3151 = dma.done.wait (!%p2889_p10), %s2515_s22, 2048  }
 0x435   : > { %3153 = vsyncadd (!%p2889_p10), %s2515_s22, 4294965248  ;;  %s23_s11 = sadd.s32 1, %s3196_s11   ;;  %s4558_s23 = sld [smem:[#allocation9_spill]] }
 0x436   : > { %p20_p11 = scmp.ge.s32.totalorder %s23_s11, 6   ;;  %s4559_s29 = sld [smem:[#allocation14_spill]] }
 0x437   : > { %s4560_s30 = sld [smem:[#allocation10_spill]]  ;;  %s4561_s8 = sld [smem:[#allocation11_spill]] }
 0x438   : > { %s4562_s9 = sld [smem:[#allocation12_spill]]  ;;  %s4563_s10 = sld [smem:[#allocation13_spill]] }
 0x439   : > { %s4564_s24 = smov %s3160_s25  ;;  %s4565_s25 = smov %s3164_s26 }
 0x43a   : > { %s4566_s26 = smov %s3341_s14  ;;  %s4567_s27 = smov %s3172_s28 }
 0x43b   : > { %s4568_s28 = smov %s4558_s23  ;;  %22 = sbr.rel (!%p20_p11) target bundleno = 9 (0x9), region = 102 }
 0x442   :  { %2520 = vsyncpa [#allocation4], 1 }
 0x443   :  { %2522 = vsyncpa [#allocation4 + $0x1], 1 }
 0x444   :  { %2523 = vsyncpa [#allocation5], 1 }
 0x445   :  { %2525 = vsyncpa [#allocation5 + $0x1], 1 }

</bundles_post_ra>
